<compile_context>
chip_gen: v5e
topology: v5e:2x2
jax: 0.10.0
libtpu: 0.0.40
codegen_flags: <defaults>
</compile_context>

<pallas_src>
import functools

import jax
import jax.numpy as jnp
from jax.experimental import pallas as pl
from jax.experimental.pallas import tpu as pltpu


def _round_up(x: int, m: int) -> int:
    return (x + m - 1) // m * m


def _linear_relu_kernel(x_ref, w_ref, b_ref, o_ref, acc_ref):
    """One (Mp, tn) output tile; K is the reduction grid axis (last).

    x_ref  : (Mp, Kp)  full, VMEM-resident activations
    w_ref  : (tk, tn)  streamed weight tile
    b_ref  : (1, tn)   bias tile (f32)
    o_ref  : (Mp, tn)  output tile
    acc_ref: (Mp, tn)  f32 accumulator scratch
    """
    k = pl.program_id(2)
    tk = w_ref.shape[0]

    @pl.when(k == 0)
    def _():
        acc_ref[...] = jnp.zeros_like(acc_ref)

    start = pl.multiple_of(k * tk, 128)
    x_blk = x_ref[:, pl.ds(start, tk)]
    acc_ref[...] += jnp.dot(x_blk, w_ref[...],
                            preferred_element_type=jnp.float32)

    @pl.when(k == pl.num_programs(2) - 1)
    def _():
        y = acc_ref[...] + b_ref[...].astype(jnp.float32)
        o_ref[...] = jnp.maximum(y, 0.0).astype(o_ref.dtype)


@functools.partial(jax.jit, static_argnames=("tn", "tk", "out_dtype"))
def linear_relu(x, w_t, b, *, tn=2048, tk=1024, out_dtype=jnp.float32):
    """relu(x @ w_t + b).  x: (M, K), w_t: (K, N) pre-transposed, b: (N,)."""
    M, K = x.shape
    K2, N = w_t.shape
    assert K == K2 and b.shape == (N,)

    compute_dtype = w_t.dtype                    # bf16 weights -> bf16 matmul
    tn_eff = min(tn, _round_up(N, 128))
    tk_eff = min(tk, _round_up(K, 128))
    Mp = _round_up(M, 8)                         # sublane-aligned batch
    Kp = _round_up(K, tk_eff)
    Np = _round_up(N, tn_eff)

    xp = x.astype(compute_dtype)
    if (Mp, Kp) != (M, K):
        xp = jnp.pad(xp, ((0, Mp - M), (0, Kp - K)))
    wp = w_t
    if (Kp, Np) != (K, N):
        wp = jnp.pad(wp, ((0, Kp - K), (0, Np - N)))
    bp = b.astype(jnp.float32)
    if Np != N:
        bp = jnp.pad(bp, (0, Np - N))
    b2d = bp.reshape(1, Np)

    grid = (1, Np // tn_eff, Kp // tk_eff)       # M fits in one block

    w_item = jnp.dtype(w_t.dtype).itemsize
    x_item = jnp.dtype(compute_dtype).itemsize
    o_item = jnp.dtype(out_dtype).itemsize
    vmem_need = (
        2 * tk_eff * tn_eff * w_item             # double-buffered weight tiles
        + Mp * Kp * x_item                       # resident activations
        + 2 * Mp * tn_eff * o_item               # double-buffered output tiles
        + Mp * tn_eff * 4                        # f32 accumulator
        + 2 * tn_eff * 4                         # bias tiles
    )
    vmem_limit = int(min(64 * 2**20, max(32 * 2**20, int(vmem_need * 1.5))))

    cost = pl.CostEstimate(
        flops=2 * Mp * Kp * Np,
        transcendentals=0,
        bytes_accessed=(Mp * Kp * x_item + Kp * Np * w_item
                        + Np * 4 + Mp * Np * o_item),
    )

    out = pl.pallas_call(
        _linear_relu_kernel,
        out_shape=jax.ShapeDtypeStruct((Mp, Np), out_dtype),
        grid_spec=pltpu.PrefetchScalarGridSpec(
            num_scalar_prefetch=0,
            grid=grid,
            in_specs=[
                pl.BlockSpec((Mp, Kp), lambda i, j, k: (i, 0)),          # x (resident)
                pl.BlockSpec((tk_eff, tn_eff), lambda i, j, k: (k, j)),  # weight stream
                pl.BlockSpec((1, tn_eff), lambda i, j, k: (0, j)),       # bias
            ],
            out_specs=pl.BlockSpec((Mp, tn_eff), lambda i, j, k: (i, j)),
            scratch_shapes=[pltpu.VMEM((Mp, tn_eff), jnp.float32)],
        ),
        compiler_params=pltpu.CompilerParams(
            dimension_semantics=("parallel", "parallel", "arbitrary"),
            vmem_limit_bytes=vmem_limit,
        ),
        cost_estimate=cost,
    )(xp, wp, b2d)

    return out[:M, :N]


def large_model_forward(x, params):
    """Two fused (Linear + ReLU) Pallas kernels, mirroring LargeModel.forward."""
    w1_t, b1, w2_t, b2 = params
    h = linear_relu(x, w1_t, b1)
    out = linear_relu(h, w2_t, b2)
    return out


def init_params(key, d, weight_dtype=jnp.bfloat16):
    """Deterministic synthetic params.  Weights pre-transposed (D_in, D_out), bf16."""
    k1, k2, k3, k4 = jax.random.split(key, 4)
    scale = 1.0 / jnp.sqrt(d)
    w1_t = jax.random.uniform(k1, (d, d), jnp.float32, -scale, scale).astype(weight_dtype)
    b1 = jax.random.uniform(k2, (d,), jnp.float32, -scale, scale)
    w2_t = jax.random.uniform(k3, (d, d), jnp.float32, -scale, scale).astype(weight_dtype)
    b2 = jax.random.uniform(k4, (d,), jnp.float32, -scale, scale)
    return w1_t, b1, w2_t, b2


if __name__ == "__main__":
    # Small stand-in shapes: the module implies x of shape (batch, 50000);
    # here (batch=2, hidden=600).  600 is deliberately NOT a multiple of 128
    # to exercise the wrapper-side padding path needed for the real D=50000.
    B, D = 2, 600
    key = jax.random.PRNGKey(0)
    kx, kp = jax.random.split(key)
    x = jax.random.normal(kx, (B, D), dtype=jnp.float32)
    params = init_params(kp, D)

    out = large_model_forward(x, params)
    out = jax.block_until_ready(out)

    # Plain-JAX reference at matched precision (bf16 inputs, f32 accumulate).
    w1_t, b1, w2_t, b2 = params
    xb = x.astype(jnp.bfloat16)
    h_ref = jnp.maximum(
        jnp.dot(xb, w1_t, preferred_element_type=jnp.float32) + b1, 0.0)
    ref = jnp.maximum(
        jnp.dot(h_ref.astype(jnp.bfloat16), w2_t,
                preferred_element_type=jnp.float32) + b2, 0.0)

    assert out.shape == (B, D)
    assert jnp.allclose(out, ref, atol=1e-2, rtol=1e-2)

    print("KERNEL_OK")
</pallas_src>

<mosaic_0001>
module attributes {stable_mosaic.version = 11 : i64} {
  func.func @_linear_relu_kernel(%arg0: i32, %arg1: i32, %arg2: i32, %arg3: memref<8x640xbf16, #tpu.memory_space<vmem>>, %arg4: memref<640x640xbf16, #tpu.memory_space<vmem>>, %arg5: memref<1x640xf32, #tpu.memory_space<vmem>>, %arg6: memref<8x640xf32, #tpu.memory_space<vmem>>, %arg7: memref<8x640xf32, #tpu.memory_space<vmem>>) attributes {dimension_semantics = [#tpu.dimension_semantics<parallel>, #tpu.dimension_semantics<parallel>, #tpu.dimension_semantics<arbitrary>], iteration_bounds = array<i64: 1, 1, 1>, scalar_prefetch = 0 : i64, scratch_operands = 1 : i64, tpu.core_type = #tpu.core_type<tc>, window_params = [{transform_indices = @transform_0, window_bounds = array<i64: 8, 640>}, {transform_indices = @transform_1, window_bounds = array<i64: 640, 640>}, {transform_indices = @transform_2, window_bounds = array<i64: 1, 640>}, {transform_indices = @transform_3, window_bounds = array<i64: 8, 640>}]} {
    %c0_i32 = arith.constant 0 : i32
    %0 = arith.cmpi eq, %arg2, %c0_i32 : i32
    %1 = arith.extui %0 : i1 to i32
    %c0_i32_0 = arith.constant 0 : i32
    %2 = arith.cmpi ne, %1, %c0_i32_0 : i32
    scf.if %2 {
      %cst_9 = arith.constant 0.000000e+00 : f32
      %15 = vector.broadcast %cst_9 : f32 to vector<8x640xf32>
      %c0_10 = arith.constant 0 : index
      %c0_11 = arith.constant 0 : index
      %16 = vector.load %arg7[%c0_10, %c0_11] : memref<8x640xf32, #tpu.memory_space<vmem>>, vector<8x640xf32>
      tpu.vector_store %arg7[%c0_10, %c0_11], %15 {strides = array<i32>} : memref<8x640xf32, #tpu.memory_space<vmem>>, vector<8x640xf32>,
    } else {
    }
    %c640_i32 = arith.constant 640 : i32
    %3 = arith.muli %arg2, %c640_i32 : i32
    %4 = tpu.assume_multiple %3, 128 : i32
    %c0 = arith.constant 0 : index
    %5 = arith.index_cast %4 : i32 to index
    %6 = vector.load %arg3[%c0, %5] : memref<8x640xbf16, #tpu.memory_space<vmem>>, vector<8x640xbf16>
    %c0_1 = arith.constant 0 : index
    %c0_2 = arith.constant 0 : index
    %7 = vector.load %arg7[%c0_1, %c0_2] : memref<8x640xf32, #tpu.memory_space<vmem>>, vector<8x640xf32>
    %c0_3 = arith.constant 0 : index
    %c0_4 = arith.constant 0 : index
    %8 = vector.load %arg4[%c0_3, %c0_4] : memref<640x640xbf16, #tpu.memory_space<vmem>>, vector<640x640xbf16>
    %cst = arith.constant dense<0.000000e+00> : vector<8x640xf32>
    %9 = tpu.matmul %6, %8, %cst {dimension_numbers = #tpu.dot_dimension_numbers<[1], [0], [0], [1], [0, 0, 1, 1], [], []>} : vector<8x640xbf16>, vector<640x640xbf16>, vector<8x640xf32> -> vector<8x640xf32>
    %10 = arith.addf %7, %9 : vector<8x640xf32>
    %c0_5 = arith.constant 0 : index
    %c0_6 = arith.constant 0 : index
    %11 = vector.load %arg7[%c0_5, %c0_6] : memref<8x640xf32, #tpu.memory_space<vmem>>, vector<8x640xf32>
    tpu.vector_store %arg7[%c0_5, %c0_6], %10 {strides = array<i32>} : memref<8x640xf32, #tpu.memory_space<vmem>>, vector<8x640xf32>,
    %c0_i32_7 = arith.constant 0 : i32
    %12 = arith.cmpi eq, %arg2, %c0_i32_7 : i32
    %13 = arith.extui %12 : i1 to i32
    %c0_i32_8 = arith.constant 0 : i32
    %14 = arith.cmpi ne, %13, %c0_i32_8 : i32
    scf.if %14 {
      %c0_9 = arith.constant 0 : index
      %c0_10 = arith.constant 0 : index
      %15 = vector.load %arg7[%c0_9, %c0_10] : memref<8x640xf32, #tpu.memory_space<vmem>>, vector<8x640xf32>
      %c0_11 = arith.constant 0 : index
      %c0_12 = arith.constant 0 : index
      %16 = vector.load %arg5[%c0_11, %c0_12] : memref<1x640xf32, #tpu.memory_space<vmem>>, vector<1x640xf32>
      %17 = vector.broadcast %16 : vector<1x640xf32> to vector<8x640xf32>
      %18 = arith.addf %15, %17 : vector<8x640xf32>
      %cst_13 = arith.constant 0.000000e+00 : f32
      %19 = vector.broadcast %cst_13 : f32 to vector<8x640xf32>
      %20 = arith.maximumf %18, %19 : vector<8x640xf32>
      %c0_14 = arith.constant 0 : index
      %c0_15 = arith.constant 0 : index
      %21 = vector.load %arg6[%c0_14, %c0_15] : memref<8x640xf32, #tpu.memory_space<vmem>>, vector<8x640xf32>
      tpu.vector_store %arg6[%c0_14, %c0_15], %20 {strides = array<i32>} : memref<8x640xf32, #tpu.memory_space<vmem>>, vector<8x640xf32>,
    } else {
    }
    return
  }
  func.func @transform_0(%arg0: i32, %arg1: i32, %arg2: i32) -> (i32, i32) {
    %c0_i32 = arith.constant 0 : i32
    %c0_i32_0 = arith.constant 0 : i32
    return %arg0, %c0_i32 : i32, i32
  }
  func.func @transform_1(%arg0: i32, %arg1: i32, %arg2: i32) -> (i32, i32) {
    %c0_i32 = arith.constant 0 : i32
    return %arg2, %arg1 : i32, i32
  }
  func.func @transform_2(%arg0: i32, %arg1: i32, %arg2: i32) -> (i32, i32) {
    %c0_i32 = arith.constant 0 : i32
    %c0_i32_0 = arith.constant 0 : i32
    return %c0_i32, %arg1 : i32, i32
  }
  func.func @transform_3(%arg0: i32, %arg1: i32, %arg2: i32) -> (i32, i32) {
    %c0_i32 = arith.constant 0 : i32
    return %arg0, %arg1 : i32, i32
  }
}

</mosaic_0001>

<bundles_post_ra>
// kernel: linear_relu.1
= control target key start
LH: loop header
LB: loop body
LE: loop exit
PB: predicated region body
PF: predicated region fallthrough
CT: control target
= control target key end

     0   :  { %s4002_s1 = inlined_call_operand.vmem [shape: bf16[640,640], index: 1, kind: input, shape index: {}]   ;;  %s4003_s0 = inlined_call_operand.vmem [shape: bf16[8,640], index: 0, kind: input, shape index: {}]   ;;  %s4004_s2 = inlined_call_operand.vmem [shape: f32[1,640], index: 2, kind: input, shape index: {}]   ;;  %s4005_s3 = inlined_call_operand.vmem [shape: f32[8,640], index: 3, kind: output, shape index: {}]  }
   0x1   :  { %v1852_v0 = vld [vmem:[%s4002_s1 + $0x118] sm:$0xf]  ;;  %v2547_v1 = vld [vmem:[%s4002_s1 + $0x128] sm:$0xf0]  ;;  %v1832_v2 = vld [vmem:[%s4002_s1 + $0xf0] sm:$0xf] }
   0x2   :  { %v1853_v3 = vor.u32 %v2547_v1, %v1852_v0  ;;  %v2542_v4 = vld [vmem:[%s4002_s1 + $0x100] sm:$0xf0]  ;;  %v2172_v5 = vld [vmem:[%s4002_s1 + $0x398] sm:$0xf]  ;;  %v2627_v6 = vld [vmem:[%s4002_s1 + $0x3a8] sm:$0xf0] }
   0x3   :  { %v2332_v7 = vld [vmem:[%s4002_s1 + $0x4d8] sm:$0xf]  ;;  %v1833_v8 = vor.u32 %v2542_v4, %v1832_v2  ;;  %v1812_v9 = vld [vmem:[%s4002_s1 + $0xc8] sm:$0xf]  ;;  %v2537_v10 = vld [vmem:[%s4002_s1 + $0xd8] sm:$0xf0]  ;;  %v2173_v11 = vor.u32 %v2627_v6, %v2172_v5 }
   0x4   :  { %1334 = vmatpush.bf16.msra.mxu0 %v1853_v3  ;;  %v2667_v12 = vld [vmem:[%s4002_s1 + $0x4e8] sm:$0xf0]  ;;  %v2012_v14 = vld [vmem:[%s4002_s1 + $0x258] sm:$0xf]  ;;  %v2152_v16 = vld [vmem:[%s4002_s1 + $0x370] sm:$0xf]  ;;  %v1813_v25 = vor.u32 %v2537_v10, %v1812_v9 }
   0x5   :  { %v2333_v13 = vor.u32 %v2667_v12, %v2332_v7  ;;  %v2587_v15 = vld [vmem:[%s4002_s1 + $0x268] sm:$0xf0]  ;;  %1360 = vmatpush.bf16.msra.mxu2 %v2173_v11  ;;  %v2622_v18 = vld [vmem:[%s4002_s1 + $0x380] sm:$0xf0]  ;;  %v2312_v19 = vld [vmem:[%s4002_s1 + $0x4b0] sm:$0xf] }
   0x6   :  { %v2013_v17 = vor.u32 %v2587_v15, %v2012_v14  ;;  %v2662_v20 = vld [vmem:[%s4002_s1 + $0x4c0] sm:$0xf0]  ;;  %v1792_v21 = vld [vmem:[%s4002_s1 + $0xa0] sm:$0xf]  ;;  %v2153_v22 = vor.u32 %v2622_v18, %v2152_v16  ;;  %v1992_v24 = vld [vmem:[%s4002_s1 + $0x230] sm:$0xf] }
   0x7   :  { %1373 = vmatpush.bf16.msra.mxu3 %v2333_v13  ;;  %v2313_v23 = vor.u32 %v2662_v20, %v2312_v19  ;;  %v2582_v26 = vld [vmem:[%s4002_s1 + $0x240] sm:$0xf0]  ;;  %v2132_v27 = vld [vmem:[%s4002_s1 + $0x348] sm:$0xf]  ;;  %v2617_v28 = vld [vmem:[%s4002_s1 + $0x358] sm:$0xf0] }
   0x8   :  { %1335 = vmatpush.bf16.msra.mxu0 %v1833_v8  ;;  %1347 = vmatpush.bf16.msra.mxu1 %v2013_v17  ;;  %v2532_v29 = vld [vmem:[%s4002_s1 + $0xb0] sm:$0xf0]  ;;  %v1993_v30 = vor.u32 %v2582_v26, %v1992_v24  ;;  %v2292_v31 = vld [vmem:[%s4002_s1 + $0x488] sm:$0xf]  ;;  %v2657_v32 = vld [vmem:[%s4002_s1 + $0x498] sm:$0xf0]  ;;  %v2133_v33 = vor.u32 %v2617_v28, %v2132_v27 }
   0x9   :  { %1361 = vmatpush.bf16.msra.mxu2 %v2153_v22  ;;  %v1972_v34 = vld [vmem:[%s4002_s1 + $0x208] sm:$0xf]  ;;  %v2577_v35 = vld [vmem:[%s4002_s1 + $0x218] sm:$0xf0]  ;;  %v2293_v36 = vor.u32 %v2657_v32, %v2292_v31  ;;  %v2112_v37 = vld [vmem:[%s4002_s1 + $0x320] sm:$0xf]  ;;  %v1793_v39 = vor.u32 %v2532_v29, %v1792_v21 }
   0xa   :  { %v2612_v38 = vld [vmem:[%s4002_s1 + $0x330] sm:$0xf0]  ;;  %v1772_v40 = vld [vmem:[%s4002_s1 + $0x78] sm:$0xf]  ;;  %v1973_v41 = vor.u32 %v2577_v35, %v1972_v34  ;;  %v2272_v42 = vld [vmem:[%s4002_s1 + $0x460] sm:$0xf] }
   0xb   :  { %1374 = vmatpush.bf16.msra.mxu3 %v2313_v23  ;;  %v2652_v43 = vld [vmem:[%s4002_s1 + $0x470] sm:$0xf0]  ;;  %v2527_v44 = vld [vmem:[%s4002_s1 + $0x88] sm:$0xf0]  ;;  %v1952_v45 = vld [vmem:[%s4002_s1 + $0x1e0] sm:$0xf]  ;;  %v2113_v47 = vor.u32 %v2612_v38, %v2112_v37 }
   0xc   :  { %1336 = vmatpush.bf16.msra.mxu0 %v1813_v25  ;;  %1348 = vmatpush.bf16.msra.mxu1 %v1993_v30  ;;  %v2572_v46 = vld [vmem:[%s4002_s1 + $0x1f0] sm:$0xf0]  ;;  %v2273_v48 = vor.u32 %v2652_v43, %v2272_v42  ;;  %v2092_v49 = vld [vmem:[%s4002_s1 + $0x2f8] sm:$0xf]  ;;  %v2607_v50 = vld [vmem:[%s4002_s1 + $0x308] sm:$0xf0]  ;;  %v1773_v51 = vor.u32 %v2527_v44, %v1772_v40 }
   0xd   :  { %1362 = vmatpush.bf16.msra.mxu2 %v2133_v33  ;;  %v1752_v52 = vld [vmem:[%s4002_s1 + $0x50] sm:$0xf]  ;;  %v1953_v53 = vor.u32 %v2572_v46, %v1952_v45  ;;  %v2252_v54 = vld [vmem:[%s4002_s1 + $0x438] sm:$0xf]  ;;  %v2647_v55 = vld [vmem:[%s4002_s1 + $0x448] sm:$0xf0]  ;;  %v2093_v59 = vor.u32 %v2607_v50, %v2092_v49 }
   0xe   :  { %v2522_v56 = vld [vmem:[%s4002_s1 + $0x60] sm:$0xf0]  ;;  %v1932_v57 = vld [vmem:[%s4002_s1 + $0x1b8] sm:$0xf]  ;;  %v2567_v58 = vld [vmem:[%s4002_s1 + $0x1c8] sm:$0xf0]  ;;  %v2253_v60 = vor.u32 %v2647_v55, %v2252_v54 }
   0xf   :  { %1375 = vmatpush.bf16.msra.mxu3 %v2293_v36  ;;  %v2072_v61 = vld [vmem:[%s4002_s1 + $0x2d0] sm:$0xf]  ;;  %v2602_v62 = vld [vmem:[%s4002_s1 + $0x2e0] sm:$0xf0]  ;;  %v1753_v63 = vor.u32 %v2522_v56, %v1752_v52  ;;  %v1732_v0 = vld [vmem:[%s4002_s1 + $0x28] sm:$0xf]  ;;  %v1933_v1 = vor.u32 %v2567_v58, %v1932_v57 }
  0x10   :  { %1337 = vmatpush.bf16.msra.mxu0 %v1793_v39  ;;  %1349 = vmatpush.bf16.msra.mxu1 %v1973_v41  ;;  %v2232_v2 = vld [vmem:[%s4002_s1 + $0x410] sm:$0xf]  ;;  %v2642_v3 = vld [vmem:[%s4002_s1 + $0x420] sm:$0xf0]  ;;  %v2517_v4 = vld [vmem:[%s4002_s1 + $0x38] sm:$0xf0]  ;;  %v2073_v7 = vor.u32 %v2602_v62, %v2072_v61 }
  0x11   :  { %1363 = vmatpush.bf16.msra.mxu2 %v2113_v47  ;;  %v1912_v5 = vld [vmem:[%s4002_s1 + $0x190] sm:$0xf]  ;;  %v2562_v6 = vld [vmem:[%s4002_s1 + $0x1a0] sm:$0xf0]  ;;  %v2233_v8 = vor.u32 %v2642_v3, %v2232_v2  ;;  %v2052_v9 = vld [vmem:[%s4002_s1 + $0x2a8] sm:$0xf]  ;;  %v1733_v11 = vor.u32 %v2517_v4, %v1732_v0 }
  0x12   :  { %v2597_v10 = vld [vmem:[%s4002_s1 + $0x2b8] sm:$0xf0]  ;;  %v1712_v12 = vld [vmem:[%s4002_s1] sm:$0xf]  ;;  %v1913_v13 = vor.u32 %v2562_v6, %v1912_v5  ;;  %v2212_v14 = vld [vmem:[%s4002_s1 + $0x3e8] sm:$0xf] }
  0x13   :  { %1376 = vmatpush.bf16.msra.mxu3 %v2273_v48  ;;  %v2637_v15 = vld [vmem:[%s4002_s1 + $0x3f8] sm:$0xf0]  ;;  %v2512_v16 = vld [vmem:[%s4002_s1 + $0x10] sm:$0xf0]  ;;  %v1892_v17 = vld [vmem:[%s4002_s1 + $0x168] sm:$0xf]  ;;  %v2053_v21 = vor.u32 %v2597_v10, %v2052_v9 }
  0x14   :  { %1338 = vmatpush.bf16.msra.mxu0 %v1773_v51  ;;  %1350 = vmatpush.bf16.msra.mxu1 %v1953_v53  ;;  %v2557_v18 = vld [vmem:[%s4002_s1 + $0x178] sm:$0xf0]  ;;  %v2492_v19 = vld [vmem:[%s4002_s1 + $0x618] sm:$0xf]  ;;  %v2707_v20 = vld [vmem:[%s4002_s1 + $0x628] sm:$0xf0]  ;;  %v2213_v23 = vor.u32 %v2637_v15, %v2212_v14  ;;  %v1713_v27 = vor.u32 %v2512_v16, %v1712_v12 }
  0x15   :  { %1364 = vmatpush.bf16.msra.mxu2 %v2093_v59  ;;  %v2032_v22 = vld [vmem:[%s4002_s1 + $0x280] sm:$0xf]  ;;  %v2592_v24 = vld [vmem:[%s4002_s1 + $0x290] sm:$0xf0]  ;;  %v2585_v25 = vld [vmem:[%s4002_s1 + $0x25c] sm:$0xf]  ;;  %v1893_v30 = vor.u32 %v2557_v18, %v1892_v17  ;;  %v2493_v34 = vor.u32 %v2707_v20, %v2492_v19 }
  0x16   :  { %v2014_v26 = vld [vmem:[%s4002_s1 + $0x26c] sm:$0xf0]  ;;  %v2702_v29 = vld [vmem:[%s4002_s1 + $0x600] sm:$0xf0]  ;;  %v2192_v31 = vld [vmem:[%s4002_s1 + $0x3c0] sm:$0xf]  ;;  %v2033_v38 = vor.u32 %v2592_v24, %v2032_v22 }
  0x17   :  { %1377 = vmatpush.bf16.msra.mxu3 %v2253_v60  ;;  %v2472_v28 = vld [vmem:[%s4002_s1 + $0x5f0] sm:$0xf]  ;;  %v2632_v32 = vld [vmem:[%s4002_s1 + $0x3d0] sm:$0xf0]  ;;  %v2625_v33 = vld [vmem:[%s4002_s1 + $0x39c] sm:$0xf]  ;;  %v2017_v42 = vor.u32 %v2585_v25, %v2014_v26 }
  0x18   :  { %1339 = vmatpush.bf16.msra.mxu0 %v1753_v63  ;;  %1351 = vmatpush.bf16.msra.mxu1 %v1933_v1  ;;  %v2174_v35 = vld [vmem:[%s4002_s1 + $0x3ac] sm:$0xf0]  ;;  %v1872_v36 = vld [vmem:[%s4002_s1 + $0x140] sm:$0xf]  ;;  %v2552_v37 = vld [vmem:[%s4002_s1 + $0x150] sm:$0xf0]  ;;  %v2193_v43 = vor.u32 %v2632_v32, %v2192_v31  ;;  %v2473_v50 = vor.u32 %v2702_v29, %v2472_v28 }
  0x19   :  { %1365 = vmatpush.bf16.msra.mxu2 %v2073_v7  ;;  %v2545_v39 = vld [vmem:[%s4002_s1 + $0x11c] sm:$0xf]  ;;  %v1854_v40 = vld [vmem:[%s4002_s1 + $0x12c] sm:$0xf0]  ;;  %v28_v41 = vld [vmem:[%s4003_s0] sm:$0xff]  ;;  %v2177_v46 = vor.u32 %v2625_v33, %v2174_v35  ;;  %v1873_v47 = vor.u32 %v2552_v37, %v1872_v36 }
  0x1a   :  { %v279_v44 = vunpack.c.l.b16 %v28_v41  ;;  %v2452_v45 = vld [vmem:[%s4002_s1 + $0x5c8] sm:$0xf]  ;;  %v2580_v48 = vld [vmem:[%s4002_s1 + $0x234] sm:$0xf]  ;;  %v2697_v51 = vld [vmem:[%s4002_s1 + $0x5d8] sm:$0xf0]  ;;  %v1857_v52 = vor.u32 %v2545_v39, %v1854_v40  ;;  %v280_v59 = vunpack.c.h.b16 %v28_v41 }
  0x1b   :  { %1378 = vmatpush.bf16.msra.mxu3 %v2233_v8  ;;  %v1994_v49 = vld [vmem:[%s4002_s1 + $0x244] sm:$0xf0]  ;;  %v2620_v53 = vld [vmem:[%s4002_s1 + $0x374] sm:$0xf]  ;;  %v2453_v63 = vor.u32 %v2697_v51, %v2452_v45  ;;  %v2575_v1 = vld [vmem:[%s4002_s1 + $0x20c] sm:$0xf] }
  0x1c   :  { %1340 = vmatpush.bf16.msra.mxu0 %v1733_v11  ;;  %1352 = vmatpush.bf16.msra.mxu1 %v1913_v13  ;;  %v2154_v54 = vld [vmem:[%s4002_s1 + $0x384] sm:$0xf0]  ;;  %v2540_v55 = vld [vmem:[%s4002_s1 + $0xf4] sm:$0xf]  ;;  %v2979_v57 = vpack.c.b16 %v279_v44, %v279_v44  ;;  %v1997_v60 = vor.u32 %v2580_v48, %v1994_v49  ;;  %v1974_v2 = vld [vmem:[%s4002_s1 + $0x21c] sm:$0xf0]  ;;  %v3013_v12 = vpack.c.b16 %v280_v59, %v280_v59 }
  0x1d   :  { %1366 = vmatpush.bf16.msra.mxu2 %v2053_v21  ;;  %v1834_v56 = vld [vmem:[%s4002_s1 + $0x104] sm:$0xf0]  ;;  %v2157_v0 = vor.u32 %v2620_v53, %v2154_v54  ;;  %v2432_v3 = vld [vmem:[%s4002_s1 + $0x5a0] sm:$0xf]  ;;  %v2615_v5 = vld [vmem:[%s4002_s1 + $0x34c] sm:$0xf]  ;;  %v1977_v13 = vor.u32 %v2575_v1, %v1974_v2 }
  0x1e   :  { %v29_v58 = vld [vmem:[%s4003_s0 + $0x8] sm:$0xff]  ;;  %v1837_v4 = vor.u32 %v2540_v55, %v1834_v56  ;;  %v2134_v6 = vld [vmem:[%s4002_s1 + $0x35c] sm:$0xf0]  ;;  %v2692_v9 = vld [vmem:[%s4002_s1 + $0x5b0] sm:$0xf0] }
  0x1f   :  { %1379 = vmatpush.bf16.msra.mxu3 %v2213_v23  ;;  %v281_v61 = vunpack.c.l.b16 %v29_v58  ;;  %v282_v62 = vunpack.c.h.b16 %v29_v58  ;;  %v2535_v10 = vld [vmem:[%s4002_s1 + $0xcc] sm:$0xf]  ;;  %v1814_v11 = vld [vmem:[%s4002_s1 + $0xdc] sm:$0xf0]  ;;  %v2137_v14 = vor.u32 %v2615_v5, %v2134_v6  ;;  %v2570_v15 = vld [vmem:[%s4002_s1 + $0x1e4] sm:$0xf]  ;;  %v2433_v17 = vor.u32 %v2692_v9, %v2432_v3 }
  0x20   :  { %1341 = vmatpush.bf16.msra.mxu0 %v1713_v27  ;;  %1353 = vmatpush.bf16.msra.mxu1 %v1893_v30  ;;  %v1954_v16 = vld [vmem:[%s4002_s1 + $0x1f4] sm:$0xf0]  ;;  %v1817_v19 = vor.u32 %v2535_v10, %v1814_v11  ;;  %v2610_v20 = vld [vmem:[%s4002_s1 + $0x324] sm:$0xf]  ;;  %v2687_v22 = vld [vmem:[%s4002_s1 + $0x588] sm:$0xf0] }
  0x21   :  { %1367 = vmatpush.bf16.msra.mxu2 %v2033_v38  ;;  %v2999_v7 = vpack.c.b16 %v281_v61, %v281_v61  ;;  %v3001_v8 = vpack.c.b16 %v282_v62, %v282_v62  ;;  %v2412_v18 = vld [vmem:[%s4002_s1 + $0x578] sm:$0xf]  ;;  %v2530_v23 = vld [vmem:[%s4002_s1 + $0xa4] sm:$0xf]  ;;  %v1957_v25 = vor.u32 %v2570_v15, %v1954_v16  ;;  %v2565_v27 = vld [vmem:[%s4002_s1 + $0x1bc] sm:$0xf] }
  0x22   :  { %v2114_v21 = vld [vmem:[%s4002_s1 + $0x334] sm:$0xf0]  ;;  %v1934_v28 = vld [vmem:[%s4002_s1 + $0x1cc] sm:$0xf0]  ;;  %v2413_v29 = vor.u32 %v2687_v22, %v2412_v18  ;;  %v2605_v32 = vld [vmem:[%s4002_s1 + $0x2fc] sm:$0xf] }
  0x23   :  { %1380 = vmatpush.bf16.msra.mxu3 %v2193_v43  ;;  %1342 = vmatmul.bf16.vlgmr.msra.gmra.mxu0 %v2979_v57  ;;  %v1794_v24 = vld [vmem:[%s4002_s1 + $0xb4] sm:$0xf0]  ;;  %v2117_v26 = vor.u32 %v2610_v20, %v2114_v21  ;;  %v2392_v30 = vld [vmem:[%s4002_s1 + $0x550] sm:$0xf]  ;;  %v2525_v35 = vld [vmem:[%s4002_s1 + $0x7c] sm:$0xf]  ;;  %v1937_v37 = vor.u32 %v2565_v27, %v1934_v28 }
  0x24   :  { %1386 = vmatpush.bf16.msrb.mxu0 %v2493_v34  ;;  %1354 = vmatpush.bf16.msra.mxu1 %v1873_v47  ;;  %v1797_v31 = vor.u32 %v2530_v23, %v1794_v24  ;;  %v2094_v33 = vld [vmem:[%s4002_s1 + $0x30c] sm:$0xf0]  ;;  %v2682_v34 = vld [vmem:[%s4002_s1 + $0x560] sm:$0xf0]  ;;  %v2560_v39 = vld [vmem:[%s4002_s1 + $0x194] sm:$0xf] }
  0x25   :  { %1412 = vmatpush.bf16.msrb.mxu2 %v2017_v42  ;;  %v1774_v36 = vld [vmem:[%s4002_s1 + $0x8c] sm:$0xf0]  ;;  %v2097_v38 = vor.u32 %v2605_v32, %v2094_v33  ;;  %v1914_v40 = vld [vmem:[%s4002_s1 + $0x1a4] sm:$0xf0]  ;;  %v2393_v41 = vor.u32 %v2682_v34, %v2392_v30  ;;  %v2600_v44 = vld [vmem:[%s4002_s1 + $0x2d4] sm:$0xf] }
  0x26   :  { %1381 = vmatmul.bf16.vlgmr.msra.gmra.mxu3 %v3001_v8  ;;  %1368 = vmatmul.bf16.vlgmr.msra.gmra.mxu2 %v2999_v7  ;;  %v2372_v42 = vld [vmem:[%s4002_s1 + $0x528] sm:$0xf]  ;;  %v1777_v43 = vor.u32 %v2525_v35, %v1774_v36  ;;  %v2520_v47 = vld [vmem:[%s4002_s1 + $0x54] sm:$0xf]  ;;  %v1917_v49 = vor.u32 %v2560_v39, %v1914_v40  ;;  %v1894_v53 = vld [vmem:[%s4002_s1 + $0x17c] sm:$0xf0] }
  0x27   :  { %1425 = vmatpush.bf16.msrb.mxu3 %v2177_v46  ;;  %1355 = vmatmul.bf16.vlgmr.msra.gmra.mxu1 %v3013_v12  ;;  %v2074_v45 = vld [vmem:[%s4002_s1 + $0x2e4] sm:$0xf0]  ;;  %v2677_v46 = vld [vmem:[%s4002_s1 + $0x538] sm:$0xf0]  ;;  %v30_v56 = vld [vmem:[%s4003_s0 + $0x10] sm:$0xf] }
  0x28   :  { %1387 = vmatpush.bf16.msrb.mxu0 %v2473_v50  ;;  %1399 = vmatpush.bf16.msrb.mxu1 %v1857_v52  ;;  %v1754_v48 = vld [vmem:[%s4002_s1 + $0x64] sm:$0xf0]  ;;  %v2352_v50 = vld [vmem:[%s4002_s1 + $0x500] sm:$0xf]  ;;  %v2077_v51 = vor.u32 %v2600_v44, %v2074_v45  ;;  %v2555_v52 = vld [vmem:[%s4002_s1 + $0x16c] sm:$0xf]  ;;  %v2373_v54 = vor.u32 %v2677_v46, %v2372_v42  ;;  %v283_v2 = vunpack.c.l.b16 %v30_v56 }
  0x29   :  { %1413 = vmatpush.bf16.msrb.mxu2 %v1997_v60  ;;  %v1757_v55 = vor.u32 %v2520_v47, %v1754_v48  ;;  %v2595_v58 = vld [vmem:[%s4002_s1 + $0x2ac] sm:$0xf]  ;;  %v2054_v59 = vld [vmem:[%s4002_s1 + $0x2bc] sm:$0xf0]  ;;  %v2672_v60 = vld [vmem:[%s4002_s1 + $0x510] sm:$0xf0]  ;;  %v1897_v1 = vor.u32 %v2555_v52, %v1894_v53 }
  0x2a   :  { %v2515_v61 = vld [vmem:[%s4002_s1 + $0x2c] sm:$0xf]  ;;  %v1734_v62 = vld [vmem:[%s4002_s1 + $0x3c] sm:$0xf0]  ;;  %v2057_v3 = vor.u32 %v2595_v58, %v2054_v59  ;;  %v1874_v5 = vld [vmem:[%s4002_s1 + $0x154] sm:$0xf0]  ;;  %v2353_v6 = vor.u32 %v2672_v60, %v2352_v50  ;;  %v3159_v23 = vpack.c.b16 %v283_v2, %v283_v2 }
  0x2b   :  { %1426 = vmatpush.bf16.msrb.mxu3 %v2157_v0  ;;  %v2334_v0 = vld [vmem:[%s4002_s1 + $0x4ec] sm:$0xf0]  ;;  %v2660_v9 = vld [vmem:[%s4002_s1 + $0x4b4] sm:$0xf]  ;;  %v1737_v10 = vor.u32 %v2515_v61, %v1734_v62  ;;  %v1860_v11 = vld [vmem:[%s4002_s1 + $0x120] sm:$0xf] }
  0x2c   :  { %1388 = vmatpush.bf16.msrb.mxu0 %v2453_v63  ;;  %1400 = vmatpush.bf16.msrb.mxu1 %v1837_v4  ;;  %v2665_v63 = vld [vmem:[%s4002_s1 + $0x4dc] sm:$0xf]  ;;  %v2550_v4 = vld [vmem:[%s4002_s1 + $0x144] sm:$0xf]  ;;  %v2034_v16 = vld [vmem:[%s4002_s1 + $0x294] sm:$0xf0] }
  0x2d   :  { %1414 = vmatpush.bf16.msrb.mxu2 %v1977_v13  ;;  %v2548_v13 = vld [vmem:[%s4002_s1 + $0x130] sm:$0xf0]  ;;  %v2337_v15 = vor.u32 %v2665_v63, %v2334_v0  ;;  %v1714_v18 = vld [vmem:[%s4002_s1 + $0x14] sm:$0xf0]  ;;  %v1877_v20 = vor.u32 %v2550_v4, %v1874_v5  ;;  %v2020_v21 = vld [vmem:[%s4002_s1 + $0x260] sm:$0xf] }
  0x2e   :  { %v2588_v22 = vld [vmem:[%s4002_s1 + $0x270] sm:$0xf0]  ;;  %v1861_v24 = vor.u32 %v2548_v13, %v1860_v11  ;;  %v2543_v30 = vld [vmem:[%s4002_s1 + $0x108] sm:$0xf0]  ;;  %v2294_v34 = vld [vmem:[%s4002_s1 + $0x49c] sm:$0xf0] }
  0x2f   :  { %1427 = vmatpush.bf16.msrb.mxu3 %v2137_v14  ;;  %v2590_v14 = vld [vmem:[%s4002_s1 + $0x284] sm:$0xf]  ;;  %v2655_v32 = vld [vmem:[%s4002_s1 + $0x48c] sm:$0xf]  ;;  %v2021_v33 = vor.u32 %v2588_v22, %v2020_v21  ;;  %v2000_v36 = vld [vmem:[%s4002_s1 + $0x238] sm:$0xf] }
  0x30   :  { %1389 = vmatpush.bf16.msrb.mxu0 %v2433_v17  ;;  %1401 = vmatpush.bf16.msrb.mxu1 %v1817_v19  ;;  %v2510_v17 = vld [vmem:[%s4002_s1 + $0x4] sm:$0xf]  ;;  %v2314_v19 = vld [vmem:[%s4002_s1 + $0x4c4] sm:$0xf0]  ;;  %v2037_v27 = vor.u32 %v2590_v14, %v2034_v16  ;;  %v2700_v39 = vld [vmem:[%s4002_s1 + $0x5f4] sm:$0xf] }
  0x31   :  { %1415 = vmatpush.bf16.msrb.mxu2 %v1957_v25  ;;  %v2705_v25 = vld [vmem:[%s4002_s1 + $0x61c] sm:$0xf]  ;;  %v1717_v28 = vor.u32 %v2510_v17, %v1714_v18  ;;  %v2474_v40 = vld [vmem:[%s4002_s1 + $0x604] sm:$0xf0]  ;;  %v2538_v42 = vld [vmem:[%s4002_s1 + $0xe0] sm:$0xf0] }
  0x32   :  { %v2650_v44 = vld [vmem:[%s4002_s1 + $0x464] sm:$0xf]  ;;  %v2274_v46 = vld [vmem:[%s4002_s1 + $0x474] sm:$0xf0]  ;;  %v2477_v47 = vor.u32 %v2700_v39, %v2474_v40  ;;  %v1980_v48 = vld [vmem:[%s4002_s1 + $0x210] sm:$0xf] }
  0x33   :  { %1428 = vmatpush.bf16.msrb.mxu3 %v2117_v26  ;;  %v2494_v26 = vld [vmem:[%s4002_s1 + $0x62c] sm:$0xf0]  ;;  %v2454_v52 = vld [vmem:[%s4002_s1 + $0x5dc] sm:$0xf0]  ;;  %v1800_v53 = vld [vmem:[%s4002_s1 + $0xa8] sm:$0xf] }
  0x34   :  { %1390 = vmatpush.bf16.msrb.mxu0 %v2413_v29  ;;  %1402 = vmatpush.bf16.msrb.mxu1 %v1797_v31  ;;  %v1840_v29 = vld [vmem:[%s4002_s1 + $0xf8] sm:$0xf]  ;;  %v2317_v31 = vor.u32 %v2660_v9, %v2314_v19  ;;  %v2497_v35 = vor.u32 %v2705_v25, %v2494_v26  ;;  %v2645_v56 = vld [vmem:[%s4002_s1 + $0x43c] sm:$0xf]  ;;  %v2254_v59 = vld [vmem:[%s4002_s1 + $0x44c] sm:$0xf0] }
  0x35   :  { %1416 = vmatpush.bf16.msrb.mxu2 %v1937_v37  ;;  %v2583_v37 = vld [vmem:[%s4002_s1 + $0x248] sm:$0xf0]  ;;  %v1960_v61 = vld [vmem:[%s4002_s1 + $0x1e8] sm:$0xf]  ;;  %v2573_v62 = vld [vmem:[%s4002_s1 + $0x1f8] sm:$0xf0]  ;;  %v2257_v4 = vor.u32 %v2645_v56, %v2254_v59 }
  0x36   :  { %v2001_v45 = vor.u32 %v2583_v37, %v2000_v36  ;;  %v2690_v0 = vld [vmem:[%s4002_s1 + $0x5a4] sm:$0xf]  ;;  %v1780_v2 = vld [vmem:[%s4002_s1 + $0x80] sm:$0xf]  ;;  %v2640_v5 = vld [vmem:[%s4002_s1 + $0x414] sm:$0xf] }
  0x37   :  { %1429 = vmatpush.bf16.msrb.mxu3 %v2097_v38  ;;  %v1841_v38 = vor.u32 %v2543_v30, %v1840_v29  ;;  %v2234_v9 = vld [vmem:[%s4002_s1 + $0x424] sm:$0xf0]  ;;  %v1940_v11 = vld [vmem:[%s4002_s1 + $0x1c0] sm:$0xf]  ;;  %v2568_v13 = vld [vmem:[%s4002_s1 + $0x1d0] sm:$0xf0] }
  0x38   :  { %1391 = vmatpush.bf16.msrb.mxu0 %v2393_v41  ;;  %1403 = vmatpush.bf16.msrb.mxu1 %v1777_v43  ;;  %v1820_v41 = vld [vmem:[%s4002_s1 + $0xd0] sm:$0xf]  ;;  %v2297_v43 = vor.u32 %v2655_v32, %v2294_v34  ;;  %v1760_v17 = vld [vmem:[%s4002_s1 + $0x58] sm:$0xf]  ;;  %v2523_v18 = vld [vmem:[%s4002_s1 + $0x68] sm:$0xf0]  ;;  %v2237_v19 = vor.u32 %v2640_v5, %v2234_v9  ;;  %v1941_v21 = vor.u32 %v2568_v13, %v1940_v11 }
  0x39   :  { %1417 = vmatpush.bf16.msrb.mxu2 %v1917_v49  ;;  %v2578_v49 = vld [vmem:[%s4002_s1 + $0x220] sm:$0xf0]  ;;  %v1821_v50 = vor.u32 %v2538_v42, %v1820_v41  ;;  %v2414_v16 = vld [vmem:[%s4002_s1 + $0x58c] sm:$0xf0]  ;;  %v2214_v22 = vld [vmem:[%s4002_s1 + $0x3fc] sm:$0xf0] }
  0x3a   :  { %v1981_v58 = vor.u32 %v2578_v49, %v1980_v48  ;;  %v1920_v25 = vld [vmem:[%s4002_s1 + $0x198] sm:$0xf]  ;;  %v2563_v26 = vld [vmem:[%s4002_s1 + $0x1a8] sm:$0xf0]  ;;  %v2394_v29 = vld [vmem:[%s4002_s1 + $0x564] sm:$0xf0] }
  0x3b   :  { %1430 = vmatpush.bf16.msrb.mxu3 %v2077_v51  ;;  %v2695_v51 = vld [vmem:[%s4002_s1 + $0x5cc] sm:$0xf]  ;;  %v1740_v30 = vld [vmem:[%s4002_s1 + $0x30] sm:$0xf]  ;;  %v2194_v34 = vld [vmem:[%s4002_s1 + $0x3d4] sm:$0xf0] }
  0x3c   :  { %1392 = vmatpush.bf16.msrb.mxu0 %v2373_v54  ;;  %1404 = vmatpush.bf16.msrb.mxu1 %v1757_v55  ;;  %v2533_v54 = vld [vmem:[%s4002_s1 + $0xb8] sm:$0xf0]  ;;  %v2277_v55 = vor.u32 %v2650_v44, %v2274_v46  ;;  %v2457_v60 = vor.u32 %v2695_v51, %v2454_v52  ;;  %v2180_v36 = vld [vmem:[%s4002_s1 + $0x3a0] sm:$0xf]  ;;  %v2558_v39 = vld [vmem:[%s4002_s1 + $0x180] sm:$0xf0] }
  0x3d   :  { %1418 = vmatpush.bf16.msrb.mxu2 %v1897_v1  ;;  %v1801_v63 = vor.u32 %v2533_v54, %v1800_v53  ;;  %v2434_v1 = vld [vmem:[%s4002_s1 + $0x5b4] sm:$0xf0]  ;;  %v2628_v40 = vld [vmem:[%s4002_s1 + $0x3b0] sm:$0xf0]  ;;  %v2675_v42 = vld [vmem:[%s4002_s1 + $0x52c] sm:$0xf] }
  0x3e   :  { %v1720_v44 = vld [vmem:[%s4002_s1 + $0x8] sm:$0xf]  ;;  %v2500_v48 = vld [vmem:[%s4002_s1 + $0x620] sm:$0xf]  ;;  %v2708_v49 = vld [vmem:[%s4002_s1 + $0x630] sm:$0xf0] }
  0x3f   :  { %1431 = vmatpush.bf16.msrb.mxu3 %v2057_v3  ;;  %v2528_v3 = vld [vmem:[%s4002_s1 + $0x90] sm:$0xf0]  ;;  %v2160_v51 = vld [vmem:[%s4002_s1 + $0x378] sm:$0xf]  ;;  %v1880_v53 = vld [vmem:[%s4002_s1 + $0x148] sm:$0xf] }
  0x40   :  { %1393 = vmatpush.bf16.msrb.mxu0 %v2353_v6  ;;  %1405 = vmatpush.bf16.msrb.mxu1 %v1737_v10  ;;  %v1961_v6 = vor.u32 %v2573_v62, %v1960_v61  ;;  %v2437_v10 = vor.u32 %v2690_v0, %v2434_v1  ;;  %v1781_v14 = vor.u32 %v2528_v3, %v1780_v2  ;;  %v2553_v54 = vld [vmem:[%s4002_s1 + $0x158] sm:$0xf0]  ;;  %v1862_v59 = vld [vmem:[%s4002_s1 + $0x134] sm:$0xf0]  ;;  %v2670_v61 = vld [vmem:[%s4002_s1 + $0x504] sm:$0xf] }
  0x41   :  { %1419 = vmatpush.bf16.msrb.mxu2 %v1877_v20  ;;  %v2635_v20 = vld [vmem:[%s4002_s1 + $0x3ec] sm:$0xf]  ;;  %v2354_v62 = vld [vmem:[%s4002_s1 + $0x514] sm:$0xf0]  ;;  %v1881_v0 = vor.u32 %v2553_v54, %v1880_v53  ;;  %v2668_v1 = vld [vmem:[%s4002_s1 + $0x4f0] sm:$0xf0] }
  0x42   :  { %v2217_v32 = vor.u32 %v2635_v20, %v2214_v22  ;;  %v2480_v2 = vld [vmem:[%s4002_s1 + $0x5f8] sm:$0xf]  ;;  %v2703_v3 = vld [vmem:[%s4002_s1 + $0x608] sm:$0xf0]  ;;  %v2140_v5 = vld [vmem:[%s4002_s1 + $0x350] sm:$0xf] }
  0x43   :  { %1394 = vmatmul.bf16.vlgmr.msrb.gmra.mxu0 %v3159_v23  ;;  %1432 = vmatpush.bf16.msrb.mxu3 %v2037_v27  ;;  %v1761_v27 = vor.u32 %v2523_v18, %v1760_v17  ;;  %v2618_v9 = vld [vmem:[%s4002_s1 + $0x360] sm:$0xf0]  ;;  %v2541_v11 = vld [vmem:[%s4002_s1 + $0xfc] sm:$0xf]  ;;  %v1842_v13 = vld [vmem:[%s4002_s1 + $0x10c] sm:$0xf0] }
  0x44   :  { %1438 = vmatpush.bf16.msra.mxu0 %v2337_v15  ;;  %1406 = vmatpush.bf16.msrb.mxu1 %v1717_v28  ;;  %v2685_v15 = vld [vmem:[%s4002_s1 + $0x57c] sm:$0xf]  ;;  %v2680_v28 = vld [vmem:[%s4002_s1 + $0x554] sm:$0xf]  ;;  %v2663_v17 = vld [vmem:[%s4002_s1 + $0x4c8] sm:$0xf0]  ;;  %v2141_v20 = vor.u32 %v2618_v9, %v2140_v5  ;;  %v1845_v22 = vor.u32 %v2541_v11, %v1842_v13 }
  0x45   :  { %1464 = vmatpush.bf16.msra.mxu2 %v1861_v24  ;;  %v2417_v24 = vor.u32 %v2685_v15, %v2414_v16  ;;  %v2397_v37 = vor.u32 %v2680_v28, %v2394_v29  ;;  %v2481_v15 = vor.u32 %v2703_v3, %v2480_v2  ;;  %v2320_v16 = vld [vmem:[%s4002_s1 + $0x4b8] sm:$0xf]  ;;  %v2460_v18 = vld [vmem:[%s4002_s1 + $0x5d0] sm:$0xf]  ;;  %v2260_v53 = vld [vmem:[%s4002_s1 + $0x440] sm:$0xf] }
  0x46   :  { %1420 = vmatmul.bf16.vlgmr.msrb.gmra.mxu2 %v3013_v12  ;;  %1433 = vmatmul.bf16.vlgmr.msrb.gmra.mxu3 %v2999_v7  ;;  %v2300_v29 = vld [vmem:[%s4002_s1 + $0x490] sm:$0xf]  ;;  %v2648_v54 = vld [vmem:[%s4002_s1 + $0x450] sm:$0xf0]  ;;  %v2240_v2 = vld [vmem:[%s4002_s1 + $0x418] sm:$0xf] }
  0x47   :  { %1477 = vmatpush.bf16.msra.mxu3 %v2021_v33  ;;  %1407 = vmatmul.bf16.vlgmr.msrb.gmra.mxu1 %v2979_v57  ;;  %v2630_v33 = vld [vmem:[%s4002_s1 + $0x3c4] sm:$0xf]  ;;  %v2643_v3 = vld [vmem:[%s4002_s1 + $0x428] sm:$0xf0]  ;;  %v2040_v9 = vld [vmem:[%s4002_s1 + $0x288] sm:$0xf] }
  0x48   :  { %1439 = vmatpush.bf16.msra.mxu0 %v2317_v31  ;;  %1451 = vmatpush.bf16.msra.mxu1 %v2497_v35  ;;  %v2518_v31 = vld [vmem:[%s4002_s1 + $0x40] sm:$0xf0]  ;;  %v1921_v35 = vor.u32 %v2563_v26, %v1920_v25  ;;  %v2197_v46 = vor.u32 %v2630_v33, %v2194_v34  ;;  %v2536_v25 = vld [vmem:[%s4002_s1 + $0xd4] sm:$0xf]  ;;  %v1822_v26 = vld [vmem:[%s4002_s1 + $0xe4] sm:$0xf0] }
  0x49   :  { %1465 = vmatpush.bf16.msra.mxu2 %v1841_v38  ;;  %v1900_v38 = vld [vmem:[%s4002_s1 + $0x170] sm:$0xf]  ;;  %v1741_v41 = vor.u32 %v2518_v31, %v1740_v30  ;;  %v2658_v30 = vld [vmem:[%s4002_s1 + $0x4a0] sm:$0xf0]  ;;  %v2440_v31 = vld [vmem:[%s4002_s1 + $0x5a8] sm:$0xf] }
  0x4a   :  { %v2100_v34 = vld [vmem:[%s4002_s1 + $0x300] sm:$0xf]  ;;  %v2678_v5 = vld [vmem:[%s4002_s1 + $0x540] sm:$0xf0]  ;;  %v2593_v11 = vld [vmem:[%s4002_s1 + $0x298] sm:$0xf0] }
  0x4b   :  { %1478 = vmatpush.bf16.msra.mxu3 %v2001_v45  ;;  %v2513_v45 = vld [vmem:[%s4002_s1 + $0x18] sm:$0xf0]  ;;  %v2516_v13 = vld [vmem:[%s4002_s1 + $0x34] sm:$0xf] }
  0x4c   :  { %1440 = vmatpush.bf16.msra.mxu0 %v2297_v43  ;;  %1452 = vmatpush.bf16.msra.mxu1 %v2477_v47  ;;  %v2374_v43 = vld [vmem:[%s4002_s1 + $0x53c] sm:$0xf0]  ;;  %v1901_v47 = vor.u32 %v2558_v39, %v1900_v38  ;;  %v1721_v56 = vor.u32 %v2513_v45, %v1720_v44  ;;  %v2301_v39 = vor.u32 %v2658_v30, %v2300_v29  ;;  %v2688_v44 = vld [vmem:[%s4002_s1 + $0x590] sm:$0xf0]  ;;  %v2581_v29 = vld [vmem:[%s4002_s1 + $0x23c] sm:$0xf] }
  0x4d   :  { %1466 = vmatpush.bf16.msra.mxu2 %v1821_v50  ;;  %v2181_v50 = vor.u32 %v2628_v40, %v2180_v36  ;;  %v2377_v52 = vor.u32 %v2675_v42, %v2374_v43  ;;  %v2608_v36 = vld [vmem:[%s4002_s1 + $0x310] sm:$0xf0]  ;;  %v1802_v38 = vld [vmem:[%s4002_s1 + $0xbc] sm:$0xf0]  ;;  %v2653_v42 = vld [vmem:[%s4002_s1 + $0x478] sm:$0xf0] }
  0x4e   :  { %v2420_v43 = vld [vmem:[%s4002_s1 + $0x580] sm:$0xf]  ;;  %v2101_v45 = vor.u32 %v2608_v36, %v2100_v34  ;;  %v2511_v30 = vld [vmem:[%s4002_s1 + $0xc] sm:$0xf]  ;;  %v2502_v36 = vld [vmem:[%s4002_s1 + $0x634] sm:$0xf0] }
  0x4f   :  { %1479 = vmatpush.bf16.msra.mxu3 %v1981_v58  ;;  %v2546_v58 = vld [vmem:[%s4002_s1 + $0x124] sm:$0xf] }
  0x50   :  { %1441 = vmatpush.bf16.msra.mxu0 %v2277_v55  ;;  %1453 = vmatpush.bf16.msra.mxu1 %v2457_v60  ;;  %v2623_v55 = vld [vmem:[%s4002_s1 + $0x388] sm:$0xf0]  ;;  %v2501_v60 = vor.u32 %v2708_v49, %v2500_v48  ;;  %v2526_v49 = vld [vmem:[%s4002_s1 + $0x84] sm:$0xf] }
  0x51   :  { %1467 = vmatpush.bf16.msra.mxu2 %v1801_v63  ;;  %v2340_v63 = vld [vmem:[%s4002_s1 + $0x4e0] sm:$0xf]  ;;  %v2603_v48 = vld [vmem:[%s4002_s1 + $0x2e8] sm:$0xf0] }
  0x53   :  { %1480 = vmatpush.bf16.msra.mxu3 %v1961_v6  ;;  %v1865_v6 = vor.u32 %v2546_v58, %v1862_v59  ;;  %v2060_v59 = vld [vmem:[%s4002_s1 + $0x2b0] sm:$0xf] }
  0x54   :  { %1442 = vmatpush.bf16.msra.mxu0 %v2257_v4  ;;  %1454 = vmatpush.bf16.msra.mxu1 %v2437_v10  ;;  %v2161_v4 = vor.u32 %v2623_v55, %v2160_v51  ;;  %v2357_v10 = vor.u32 %v2670_v61, %v2354_v62  ;;  %v2400_v55 = vld [vmem:[%s4002_s1 + $0x558] sm:$0xf]  ;;  %v2598_v61 = vld [vmem:[%s4002_s1 + $0x2c0] sm:$0xf0]  ;;  %v2521_v62 = vld [vmem:[%s4002_s1 + $0x5c] sm:$0xf] }
  0x55   :  { %1468 = vmatpush.bf16.msra.mxu2 %v1781_v14  ;;  %v2341_v14 = vor.u32 %v2668_v1, %v2340_v63  ;;  %v1762_v63 = vld [vmem:[%s4002_s1 + $0x6c] sm:$0xf0] }
  0x57   :  { %1481 = vmatpush.bf16.msra.mxu3 %v1941_v21  ;;  %v2120_v21 = vld [vmem:[%s4002_s1 + $0x328] sm:$0xf] }
  0x58   :  { %1443 = vmatpush.bf16.msra.mxu0 %v2237_v19  ;;  %1455 = vmatpush.bf16.msra.mxu1 %v2417_v24  ;;  %v2698_v19 = vld [vmem:[%s4002_s1 + $0x5e0] sm:$0xf0]  ;;  %v2613_v24 = vld [vmem:[%s4002_s1 + $0x338] sm:$0xf0] }
  0x59   :  { %1469 = vmatpush.bf16.msra.mxu2 %v1761_v27  ;;  %v2321_v27 = vor.u32 %v2663_v17, %v2320_v16  ;;  %v2461_v28 = vor.u32 %v2698_v19, %v2460_v18  ;;  %v2121_v33 = vor.u32 %v2613_v24, %v2120_v21  ;;  %v2022_v16 = vld [vmem:[%s4002_s1 + $0x274] sm:$0xf0]  ;;  %v2241_v17 = vor.u32 %v2643_v3, %v2240_v2  ;;  %v2220_v19 = vld [vmem:[%s4002_s1 + $0x3f0] sm:$0xf]  ;;  %v2360_v21 = vld [vmem:[%s4002_s1 + $0x508] sm:$0xf] }
  0x5a   :  { %v2041_v24 = vor.u32 %v2593_v11, %v2040_v9  ;;  %v2616_v3 = vld [vmem:[%s4002_s1 + $0x354] sm:$0xf] }
  0x5b   :  { %1482 = vmatpush.bf16.msra.mxu3 %v1921_v35  ;;  %v1825_v35 = vor.u32 %v2536_v25, %v1822_v26  ;;  %v2666_v26 = vld [vmem:[%s4002_s1 + $0x4e4] sm:$0xf] }
  0x5c   :  { %1444 = vmatpush.bf16.msra.mxu0 %v2217_v32  ;;  %1456 = vmatpush.bf16.msra.mxu1 %v2397_v37  ;;  %v2693_v32 = vld [vmem:[%s4002_s1 + $0x5b8] sm:$0xf0]  ;;  %v2531_v37 = vld [vmem:[%s4002_s1 + $0xac] sm:$0xf] }
  0x5d   :  { %1470 = vmatpush.bf16.msra.mxu2 %v1741_v41  ;;  %v2441_v40 = vor.u32 %v2693_v32, %v2440_v31  ;;  %v2280_v41 = vld [vmem:[%s4002_s1 + $0x468] sm:$0xf]  ;;  %v1722_v31 = vld [vmem:[%s4002_s1 + $0x1c] sm:$0xf0]  ;;  %v2002_v32 = vld [vmem:[%s4002_s1 + $0x24c] sm:$0xf0] }
  0x5e   :  { %v2281_v51 = vor.u32 %v2653_v42, %v2280_v41  ;;  %v1725_v41 = vor.u32 %v2511_v30, %v1722_v31  ;;  %v2182_v42 = vld [vmem:[%s4002_s1 + $0x3b4] sm:$0xf0]  ;;  %v2606_v31 = vld [vmem:[%s4002_s1 + $0x304] sm:$0xf] }
  0x5f   :  { %1483 = vmatpush.bf16.msra.mxu3 %v1901_v47  ;;  %v1805_v47 = vor.u32 %v2531_v37, %v1802_v38  ;;  %v2200_v38 = vld [vmem:[%s4002_s1 + $0x3c8] sm:$0xf] }
  0x60   :  { %1445 = vmatpush.bf16.msra.mxu0 %v2197_v46  ;;  %1457 = vmatpush.bf16.msra.mxu1 %v2377_v52  ;;  %v2080_v46 = vld [vmem:[%s4002_s1 + $0x2d8] sm:$0xf]  ;;  %v2421_v52 = vor.u32 %v2688_v44, %v2420_v43  ;;  %v2661_v43 = vld [vmem:[%s4002_s1 + $0x4bc] sm:$0xf]  ;;  %v2322_v44 = vld [vmem:[%s4002_s1 + $0x4cc] sm:$0xf0] }
  0x61   :  { %1471 = vmatpush.bf16.msra.mxu2 %v1721_v56  ;;  %v2683_v56 = vld [vmem:[%s4002_s1 + $0x568] sm:$0xf0]  ;;  %v2081_v58 = vor.u32 %v2603_v48, %v2080_v46  ;;  %v2576_v46 = vld [vmem:[%s4002_s1 + $0x214] sm:$0xf]  ;;  %v1982_v48 = vld [vmem:[%s4002_s1 + $0x224] sm:$0xf0] }
  0x62   :  { %v2401_v1 = vor.u32 %v2683_v56, %v2400_v55  ;;  %v2162_v55 = vld [vmem:[%s4002_s1 + $0x38c] sm:$0xf0]  ;;  %v2656_v56 = vld [vmem:[%s4002_s1 + $0x494] sm:$0xf] }
  0x63   :  { %1446 = vmatmul.bf16.vlgmr.msra.gmra.mxu0 %v3001_v8  ;;  %1484 = vmatpush.bf16.msra.mxu3 %v1881_v0  ;;  %v2261_v0 = vor.u32 %v2648_v54, %v2260_v53  ;;  %v2325_v53 = vor.u32 %v2661_v43, %v2322_v44  ;;  %v2621_v54 = vld [vmem:[%s4002_s1 + $0x37c] sm:$0xf]  ;;  %v2082_v44 = vld [vmem:[%s4002_s1 + $0x2ec] sm:$0xf0] }
  0x64   :  { %1490 = vmatpush.bf16.msrb.mxu0 %v2181_v50  ;;  %1458 = vmatpush.bf16.msra.mxu1 %v2357_v10  ;;  %v1782_v50 = vld [vmem:[%s4002_s1 + $0x94] sm:$0xf0]  ;;  %v1765_v10 = vor.u32 %v2521_v62, %v1762_v63  ;;  %v1962_v62 = vld [vmem:[%s4002_s1 + $0x1fc] sm:$0xf0]  ;;  %v2696_v63 = vld [vmem:[%s4002_s1 + $0x5d4] sm:$0xf] }
  0x65   :  { %1516 = vmatpush.bf16.msrb.mxu2 %v2501_v60  ;;  %v1785_v60 = vor.u32 %v2526_v49, %v1782_v50  ;;  %v2701_v50 = vld [vmem:[%s4002_s1 + $0x5fc] sm:$0xf] }
  0x66   :  { %1472 = vmatmul.bf16.vlgmr.msra.gmra.mxu2 %v2979_v57  ;;  %1485 = vmatmul.bf16.vlgmr.msra.gmra.mxu3 %v3013_v12  ;;  %v2601_v43 = vld [vmem:[%s4002_s1 + $0x2dc] sm:$0xf] }
  0x67   :  { %1529 = vmatpush.bf16.msrb.mxu3 %v1865_v6  ;;  %1459 = vmatmul.bf16.vlgmr.msra.gmra.mxu1 %v3159_v23  ;;  %v2061_v6 = vor.u32 %v2598_v61, %v2060_v59  ;;  %v1985_v59 = vor.u32 %v2576_v46, %v1982_v48  ;;  %v2222_v46 = vld [vmem:[%s4002_s1 + $0x404] sm:$0xf0]  ;;  %v2551_v48 = vld [vmem:[%s4002_s1 + $0x14c] sm:$0xf] }
  0x68   :  { %1491 = vmatpush.bf16.msrb.mxu0 %v2161_v4  ;;  %1503 = vmatpush.bf16.msrb.mxu1 %v2341_v14  ;;  %v2380_v4 = vld [vmem:[%s4002_s1 + $0x530] sm:$0xf]  ;;  %v1742_v14 = vld [vmem:[%s4002_s1 + $0x44] sm:$0xf0] }
  0x69   :  { %1517 = vmatpush.bf16.msrb.mxu2 %v2481_v15  ;;  %v2586_v15 = vld [vmem:[%s4002_s1 + $0x264] sm:$0xf]  ;;  %v2381_v18 = vor.u32 %v2678_v5, %v2380_v4  ;;  %v1745_v25 = vor.u32 %v2516_v13, %v1742_v14  ;;  %v2142_v4 = vld [vmem:[%s4002_s1 + $0x364] sm:$0xf0]  ;;  %v2651_v5 = vld [vmem:[%s4002_s1 + $0x46c] sm:$0xf] }
  0x6a   :  { %v1942_v13 = vld [vmem:[%s4002_s1 + $0x1d4] sm:$0xf0]  ;;  %v2691_v14 = vld [vmem:[%s4002_s1 + $0x5ac] sm:$0xf] }
  0x6b   :  { %1530 = vmatpush.bf16.msrb.mxu3 %v1845_v22  ;;  %v2673_v22 = vld [vmem:[%s4002_s1 + $0x518] sm:$0xf0] }
  0x6c   :  { %1492 = vmatpush.bf16.msrb.mxu0 %v2141_v20  ;;  %1504 = vmatpush.bf16.msrb.mxu1 %v2321_v27  ;;  %v2638_v20 = vld [vmem:[%s4002_s1 + $0x400] sm:$0xf0]  ;;  %v2342_v27 = vld [vmem:[%s4002_s1 + $0x4f4] sm:$0xf0]  ;;  %v2361_v34 = vor.u32 %v2673_v22, %v2360_v21 }
  0x6d   :  { %1518 = vmatpush.bf16.msrb.mxu2 %v2461_v28  ;;  %v2025_v28 = vor.u32 %v2586_v15, %v2022_v16  ;;  %v2345_v37 = vor.u32 %v2666_v26, %v2342_v27  ;;  %v2442_v15 = vld [vmem:[%s4002_s1 + $0x5bc] sm:$0xf0]  ;;  %v2145_v16 = vor.u32 %v2616_v3, %v2142_v4  ;;  %v2262_v21 = vld [vmem:[%s4002_s1 + $0x454] sm:$0xf0]  ;;  %v1922_v26 = vld [vmem:[%s4002_s1 + $0x1ac] sm:$0xf0] }
  0x6e   :  { %v2686_v27 = vld [vmem:[%s4002_s1 + $0x584] sm:$0xf]  ;;  %v1848_v3 = vld [vmem:[%s4002_s1 + $0x100] sm:$0xf]  ;;  %v2671_v4 = vld [vmem:[%s4002_s1 + $0x50c] sm:$0xf] }
  0x6f   :  { %1531 = vmatpush.bf16.msrb.mxu3 %v1825_v35  ;;  %v2706_v35 = vld [vmem:[%s4002_s1 + $0x624] sm:$0xf] }
  0x70   :  { %1493 = vmatpush.bf16.msrb.mxu0 %v2121_v33  ;;  %1505 = vmatpush.bf16.msrb.mxu1 %v2301_v39  ;;  %v2221_v33 = vor.u32 %v2638_v20, %v2220_v19  ;;  %v2633_v39 = vld [vmem:[%s4002_s1 + $0x3d8] sm:$0xf0]  ;;  %v2122_v19 = vld [vmem:[%s4002_s1 + $0x33c] sm:$0xf0]  ;;  %v2646_v20 = vld [vmem:[%s4002_s1 + $0x444] sm:$0xf] }
  0x71   :  { %1519 = vmatpush.bf16.msrb.mxu2 %v2441_v40  ;;  %v2626_v40 = vld [vmem:[%s4002_s1 + $0x3a4] sm:$0xf]  ;;  %v2201_v49 = vor.u32 %v2633_v39, %v2200_v38  ;;  %v2265_v30 = vor.u32 %v2646_v20, %v2262_v21  ;;  %v1902_v38 = vld [vmem:[%s4002_s1 + $0x184] sm:$0xf0]  ;;  %v2681_v39 = vld [vmem:[%s4002_s1 + $0x55c] sm:$0xf] }
  0x72   :  { %v2168_v20 = vld [vmem:[%s4002_s1 + $0x380] sm:$0xf]  ;;  %v2624_v21 = vld [vmem:[%s4002_s1 + $0x390] sm:$0xf0] }
  0x73   :  { %1532 = vmatpush.bf16.msrb.mxu3 %v1805_v47  ;;  %v2505_v47 = vor.u32 %v2706_v35, %v2502_v36  ;;  %v2556_v36 = vld [vmem:[%s4002_s1 + $0x174] sm:$0xf] }
  0x74   :  { %1494 = vmatpush.bf16.msrb.mxu0 %v2101_v45  ;;  %1506 = vmatpush.bf16.msrb.mxu1 %v2281_v51  ;;  %v2005_v45 = vor.u32 %v2581_v29, %v2002_v32  ;;  %v2482_v51 = vld [vmem:[%s4002_s1 + $0x60c] sm:$0xf0]  ;;  %v2102_v32 = vld [vmem:[%s4002_s1 + $0x314] sm:$0xf0] }
  0x75   :  { %1520 = vmatpush.bf16.msrb.mxu2 %v2421_v52  ;;  %v2185_v52 = vor.u32 %v2626_v40, %v2182_v42  ;;  %v2485_v61 = vor.u32 %v2701_v50, %v2482_v51  ;;  %v2402_v40 = vld [vmem:[%s4002_s1 + $0x56c] sm:$0xf0]  ;;  %v1882_v50 = vld [vmem:[%s4002_s1 + $0x15c] sm:$0xf0]  ;;  %v2676_v51 = vld [vmem:[%s4002_s1 + $0x534] sm:$0xf] }
  0x77   :  { %1533 = vmatpush.bf16.msrb.mxu3 %v1785_v60  ;;  %v2571_v60 = vld [vmem:[%s4002_s1 + $0x1ec] sm:$0xf] }
  0x78   :  { %1495 = vmatpush.bf16.msrb.mxu0 %v2081_v58  ;;  %1507 = vmatpush.bf16.msrb.mxu1 %v2261_v0  ;;  %v2302_v58 = vld [vmem:[%s4002_s1 + $0x4a4] sm:$0xf0]  ;;  %v1965_v9 = vor.u32 %v2571_v60, %v1962_v62  ;;  %v2631_v60 = vld [vmem:[%s4002_s1 + $0x3cc] sm:$0xf]  ;;  %v1885_v62 = vor.u32 %v2551_v48, %v1882_v50 }
  0x79   :  { %1521 = vmatpush.bf16.msrb.mxu2 %v2401_v1  ;;  %v2462_v0 = vld [vmem:[%s4002_s1 + $0x5e4] sm:$0xf0]  ;;  %v2165_v1 = vor.u32 %v2621_v54, %v2162_v55  ;;  %v2305_v2 = vor.u32 %v2656_v56, %v2302_v58  ;;  %v2549_v54 = vld [vmem:[%s4002_s1 + $0x138] sm:$0xf0]  ;;  %v2085_v55 = vor.u32 %v2601_v43, %v2082_v44  ;;  %v2596_v58 = vld [vmem:[%s4002_s1 + $0x2b4] sm:$0xf] }
  0x7a   :  { %v2465_v11 = vor.u32 %v2696_v63, %v2462_v0  ;;  %v2188_v0 = vld [vmem:[%s4002_s1 + $0x3a8] sm:$0xf]  ;;  %v1988_v44 = vld [vmem:[%s4002_s1 + $0x218] sm:$0xf] }
  0x7b   :  { %1534 = vmatpush.bf16.msrb.mxu3 %v1765_v10  ;;  %v2566_v10 = vld [vmem:[%s4002_s1 + $0x1c4] sm:$0xf] }
  0x7c   :  { %1496 = vmatpush.bf16.msrb.mxu0 %v2061_v6  ;;  %1508 = vmatpush.bf16.msrb.mxu1 %v2241_v17  ;;  %v2282_v6 = vld [vmem:[%s4002_s1 + $0x47c] sm:$0xf0]  ;;  %v1945_v22 = vor.u32 %v2566_v10, %v1942_v13  ;;  %v2669_v13 = vld [vmem:[%s4002_s1 + $0x4f8] sm:$0xf0] }
  0x7d   :  { %1522 = vmatpush.bf16.msrb.mxu2 %v2381_v18  ;;  %v2285_v17 = vor.u32 %v2651_v5, %v2282_v6  ;;  %v2611_v18 = vld [vmem:[%s4002_s1 + $0x32c] sm:$0xf]  ;;  %v2362_v5 = vld [vmem:[%s4002_s1 + $0x51c] sm:$0xf0]  ;;  %v2544_v6 = vld [vmem:[%s4002_s1 + $0x110] sm:$0xf0] }
  0x7e   :  { %v2125_v29 = vor.u32 %v2611_v18, %v2122_v19  ;;  %v2365_v18 = vor.u32 %v2671_v4, %v2362_v5  ;;  %v2589_v19 = vld [vmem:[%s4002_s1 + $0x278] sm:$0xf0] }
  0x7f   :  { %1535 = vmatpush.bf16.msrb.mxu3 %v1745_v25  ;;  %v2445_v25 = vor.u32 %v2691_v14, %v2442_v15  ;;  %v2591_v15 = vld [vmem:[%s4002_s1 + $0x28c] sm:$0xf] }
  0x80   :  { %1497 = vmatpush.bf16.msrb.mxu0 %v2041_v24  ;;  %1509 = vmatpush.bf16.msrb.mxu1 %v2221_v33  ;;  %v2561_v24 = vld [vmem:[%s4002_s1 + $0x19c] sm:$0xf] }
  0x81   :  { %1523 = vmatpush.bf16.msrb.mxu2 %v2361_v34  ;;  %v2641_v33 = vld [vmem:[%s4002_s1 + $0x41c] sm:$0xf]  ;;  %v2242_v34 = vld [vmem:[%s4002_s1 + $0x42c] sm:$0xf0]  ;;  %v1925_v35 = vor.u32 %v2561_v24, %v1922_v26  ;;  %v1828_v24 = vld [vmem:[%s4002_s1 + $0xd8] sm:$0xf] }
  0x82   :  { %v2245_v42 = vor.u32 %v2641_v33, %v2242_v34  ;;  %v2539_v26 = vld [vmem:[%s4002_s1 + $0xe8] sm:$0xf0]  ;;  %v2584_v33 = vld [vmem:[%s4002_s1 + $0x250] sm:$0xf0]  ;;  %v2148_v34 = vld [vmem:[%s4002_s1 + $0x358] sm:$0xf] }
  0x83   :  { %1498 = vmatmul.bf16.vlgmr.msrb.gmra.mxu0 %v2999_v7  ;;  %1536 = vmatpush.bf16.msrb.mxu3 %v1725_v41  ;;  %v2105_v41 = vor.u32 %v2606_v31, %v2102_v32  ;;  %v2169_v31 = vor.u32 %v2624_v21, %v2168_v20  ;;  %v2008_v32 = vld [vmem:[%s4002_s1 + $0x240] sm:$0xf] }
  0x84   :  { %1542 = vmatpush.bf16.msra.mxu0 %v2025_v28  ;;  %1510 = vmatpush.bf16.msrb.mxu1 %v2201_v49  ;;  %v2422_v28 = vld [vmem:[%s4002_s1 + $0x594] sm:$0xf0]  ;;  %v2405_v49 = vor.u32 %v2681_v39, %v2402_v40  ;;  %v2534_v39 = vld [vmem:[%s4002_s1 + $0xc0] sm:$0xf0]  ;;  %v1928_v21 = vld [vmem:[%s4002_s1 + $0x1a0] sm:$0xf] }
  0x85   :  { %1568 = vmatpush.bf16.msra.mxu2 %v2345_v37  ;;  %v2425_v37 = vor.u32 %v2686_v27, %v2422_v28  ;;  %v2328_v28 = vld [vmem:[%s4002_s1 + $0x4c0] sm:$0xf]  ;;  %v2308_v40 = vld [vmem:[%s4002_s1 + $0x498] sm:$0xf] }
  0x86   :  { %1524 = vmatmul.bf16.vlgmr.msrb.gmra.mxu2 %v3159_v23  ;;  %1537 = vmatmul.bf16.vlgmr.msrb.gmra.mxu3 %v2979_v57 }
  0x87   :  { %1581 = vmatpush.bf16.msra.mxu3 %v2505_v47  ;;  %1511 = vmatmul.bf16.vlgmr.msrb.gmra.mxu1 %v3001_v8  ;;  %v1905_v47 = vor.u32 %v2556_v36, %v1902_v38  ;;  %v1829_v36 = vor.u32 %v2539_v26, %v1828_v24  ;;  %v2564_v24 = vld [vmem:[%s4002_s1 + $0x1b0] sm:$0xf0]  ;;  %v2599_v26 = vld [vmem:[%s4002_s1 + $0x2c8] sm:$0xf0] }
  0x88   :  { %1543 = vmatpush.bf16.msra.mxu0 %v2005_v45  ;;  %1555 = vmatpush.bf16.msra.mxu1 %v2185_v52  ;;  %v2636_v45 = vld [vmem:[%s4002_s1 + $0x3f4] sm:$0xf]  ;;  %v2382_v52 = vld [vmem:[%s4002_s1 + $0x544] sm:$0xf0] }
  0x89   :  { %1569 = vmatpush.bf16.msra.mxu2 %v2325_v53  ;;  %v1868_v53 = vld [vmem:[%s4002_s1 + $0x128] sm:$0xf]  ;;  %v2225_v56 = vor.u32 %v2636_v45, %v2222_v46  ;;  %v2385_v63 = vor.u32 %v2676_v51, %v2382_v52  ;;  %v2579_v45 = vld [vmem:[%s4002_s1 + $0x228] sm:$0xf0]  ;;  %v2128_v46 = vld [vmem:[%s4002_s1 + $0x330] sm:$0xf] }
  0x8a   :  { %v2529_v51 = vld [vmem:[%s4002_s1 + $0x98] sm:$0xf0]  ;;  %v2288_v52 = vld [vmem:[%s4002_s1 + $0x470] sm:$0xf] }
  0x8b   :  { %1582 = vmatpush.bf16.msra.mxu3 %v2485_v61  ;;  %v2202_v61 = vld [vmem:[%s4002_s1 + $0x3dc] sm:$0xf0] }
  0x8c   :  { %1544 = vmatpush.bf16.msra.mxu0 %v1985_v59  ;;  %1556 = vmatpush.bf16.msra.mxu1 %v2165_v1  ;;  %v2062_v59 = vld [vmem:[%s4002_s1 + $0x2c4] sm:$0xf0]  ;;  %v2629_v1 = vld [vmem:[%s4002_s1 + $0x3b8] sm:$0xf0]  ;;  %v2205_v10 = vor.u32 %v2631_v60, %v2202_v61 }
  0x8d   :  { %1570 = vmatpush.bf16.msra.mxu2 %v2305_v2  ;;  %v1869_v2 = vor.u32 %v2549_v54, %v1868_v53  ;;  %v2189_v14 = vor.u32 %v2629_v1, %v2188_v0  ;;  %v2654_v53 = vld [vmem:[%s4002_s1 + $0x480] sm:$0xf0]  ;;  %v1989_v54 = vor.u32 %v2579_v45, %v1988_v44  ;;  %v2609_v60 = vld [vmem:[%s4002_s1 + $0x318] sm:$0xf0]  ;;  %v2524_v0 = vld [vmem:[%s4002_s1 + $0x70] sm:$0xf0] }
  0x8e   :  { %v2268_v1 = vld [vmem:[%s4002_s1 + $0x448] sm:$0xf] }
  0x8f   :  { %1583 = vmatpush.bf16.msra.mxu3 %v2465_v11  ;;  %v2348_v11 = vld [vmem:[%s4002_s1 + $0x4e8] sm:$0xf] }
  0x90   :  { %1545 = vmatpush.bf16.msra.mxu0 %v1965_v9  ;;  %1557 = vmatpush.bf16.msra.mxu1 %v2145_v16  ;;  %v2065_v9 = vor.u32 %v2596_v58, %v2062_v59  ;;  %v2042_v16 = vld [vmem:[%s4002_s1 + $0x29c] sm:$0xf0]  ;;  %v2574_v58 = vld [vmem:[%s4002_s1 + $0x200] sm:$0xf0]  ;;  %v2108_v59 = vld [vmem:[%s4002_s1 + $0x308] sm:$0xf] }
  0x91   :  { %1571 = vmatpush.bf16.msra.mxu2 %v2285_v17  ;;  %v2028_v17 = vld [vmem:[%s4002_s1 + $0x268] sm:$0xf]  ;;  %v2045_v27 = vor.u32 %v2591_v15, %v2042_v16  ;;  %v2109_v4 = vor.u32 %v2609_v60, %v2108_v59  ;;  %v2519_v16 = vld [vmem:[%s4002_s1 + $0x48] sm:$0xf0] }
  0x93   :  { %1584 = vmatpush.bf16.msra.mxu3 %v2445_v25  ;;  %v2349_v25 = vor.u32 %v2669_v13, %v2348_v11  ;;  %v2604_v11 = vld [vmem:[%s4002_s1 + $0x2f0] sm:$0xf0] }
  0x94   :  { %1546 = vmatpush.bf16.msra.mxu0 %v1945_v22  ;;  %1558 = vmatpush.bf16.msra.mxu1 %v2125_v29  ;;  %v1849_v22 = vor.u32 %v2544_v6, %v1848_v3  ;;  %v2664_v29 = vld [vmem:[%s4002_s1 + $0x4d0] sm:$0xf0]  ;;  %v1948_v6 = vld [vmem:[%s4002_s1 + $0x1c8] sm:$0xf] }
  0x95   :  { %1572 = vmatpush.bf16.msra.mxu2 %v2265_v30  ;;  %v2029_v30 = vor.u32 %v2589_v19, %v2028_v17  ;;  %v2329_v38 = vor.u32 %v2664_v29, %v2328_v28  ;;  %v2248_v17 = vld [vmem:[%s4002_s1 + $0x420] sm:$0xf]  ;;  %v1728_v28 = vld [vmem:[%s4002_s1 + $0x10] sm:$0xf] }
  0x97   :  { %1585 = vmatpush.bf16.msra.mxu3 %v2425_v37  ;;  %v1808_v37 = vld [vmem:[%s4002_s1 + $0xb0] sm:$0xf] }
  0x98   :  { %1547 = vmatpush.bf16.msra.mxu0 %v1925_v35  ;;  %1559 = vmatpush.bf16.msra.mxu1 %v2105_v41  ;;  %v2619_v35 = vld [vmem:[%s4002_s1 + $0x368] sm:$0xf0]  ;;  %v1809_v48 = vor.u32 %v2534_v39, %v1808_v37  ;;  %v1908_v39 = vld [vmem:[%s4002_s1 + $0x178] sm:$0xf] }
  0x99   :  { %1573 = vmatpush.bf16.msra.mxu2 %v2245_v42  ;;  %v2659_v41 = vld [vmem:[%s4002_s1 + $0x4a8] sm:$0xf0]  ;;  %v2009_v42 = vor.u32 %v2584_v33, %v2008_v32  ;;  %v2149_v43 = vor.u32 %v2619_v35, %v2148_v34  ;;  %v2508_v34 = vld [vmem:[%s4002_s1 + $0x628] sm:$0xf]  ;;  %v2709_v35 = vld [vmem:[%s4002_s1 + $0x638] sm:$0xf0] }
  0x9a   :  { %v2309_v50 = vor.u32 %v2659_v41, %v2308_v40  ;;  %v2639_v32 = vld [vmem:[%s4002_s1 + $0x408] sm:$0xf0] }
  0x9b   :  { %1586 = vmatpush.bf16.msra.mxu3 %v2405_v49  ;;  %v1788_v49 = vld [vmem:[%s4002_s1 + $0x88] sm:$0xf]  ;;  %v2559_v41 = vld [vmem:[%s4002_s1 + $0x188] sm:$0xf0] }
  0x9c   :  { %1548 = vmatpush.bf16.msra.mxu0 %v1905_v47  ;;  %1560 = vmatpush.bf16.msra.mxu1 %v2085_v55  ;;  %v2614_v47 = vld [vmem:[%s4002_s1 + $0x340] sm:$0xf0]  ;;  %v1789_v61 = vor.u32 %v2529_v51, %v1788_v49  ;;  %v2488_v49 = vld [vmem:[%s4002_s1 + $0x600] sm:$0xf]  ;;  %v1909_v51 = vor.u32 %v2559_v41, %v1908_v39 }
  0x9d   :  { %1574 = vmatpush.bf16.msra.mxu2 %v2225_v56  ;;  %v2129_v55 = vor.u32 %v2614_v47, %v2128_v46  ;;  %v1968_v56 = vld [vmem:[%s4002_s1 + $0x1f0] sm:$0xf]  ;;  %v2509_v46 = vor.u32 %v2709_v35, %v2508_v34 }
  0x9e   :  { %v1969_v3 = vor.u32 %v2574_v58, %v1968_v56  ;;  %v2208_v47 = vld [vmem:[%s4002_s1 + $0x3d0] sm:$0xf] }
  0x9f   :  { %1587 = vmatpush.bf16.msra.mxu3 %v2385_v63  ;;  %v2289_v63 = vor.u32 %v2654_v53, %v2288_v52 }
  0xa0   :  { %1549 = vmatpush.bf16.msra.mxu0 %v1885_v62  ;;  %1561 = vmatpush.bf16.msra.mxu1 %v2065_v9  ;;  %v1768_v62 = vld [vmem:[%s4002_s1 + $0x60] sm:$0xf]  ;;  %v3849_v5 = vpop.f32.mrf.mxu0  ;;  %v2569_v9 = vld [vmem:[%s4002_s1 + $0x1d8] sm:$0xf0] }
  0xa1   :  { %1575 = vmatpush.bf16.msra.mxu2 %v2205_v10  ;;  %v2088_v10 = vld [vmem:[%s4002_s1 + $0x2e0] sm:$0xf]  ;;  %v1769_v13 = vor.u32 %v2524_v0, %v1768_v62  ;;  %v1949_v19 = vor.u32 %v2569_v9, %v1948_v6  ;;  %v2699_v62 = vld [vmem:[%s4002_s1 + $0x5e8] sm:$0xf0]  ;;  %v2689_v9 = vld [vmem:[%s4002_s1 + $0x598] sm:$0xf0] }
  0xa2   :  { %v2089_v20 = vor.u32 %v2604_v11, %v2088_v10 }
  0xa3   :  { %1550 = vmatmul.bf16.vlgmr.msra.gmra.mxu0 %v3013_v12  ;;  %1588 = vmatpush.bf16.msra.mxu3 %v2365_v18  ;;  %v2644_v18 = vld [vmem:[%s4002_s1 + $0x430] sm:$0xf0] }
  0xa4   :  { %1594 = vmatpush.bf16.msrb.mxu0 %v1869_v2  ;;  %1562 = vmatpush.bf16.msra.mxu1 %v2045_v27  ;;  %v2649_v2 = vld [vmem:[%s4002_s1 + $0x458] sm:$0xf0]  ;;  %v2249_v29 = vor.u32 %v2644_v18, %v2248_v17 }
  0xa5   :  { %1620 = vmatpush.bf16.msrb.mxu2 %v2189_v14  ;;  %v1748_v14 = vld [vmem:[%s4002_s1 + $0x38] sm:$0xf]  ;;  %v2269_v15 = vor.u32 %v2649_v2, %v2268_v1 }
  0xa6   :  { %1576 = vmatmul.bf16.vlgmr.msra.gmra.mxu2 %v3001_v8  ;;  %1589 = vmatmul.bf16.vlgmr.msra.gmra.mxu3 %v3159_v23  ;;  %v1749_v27 = vor.u32 %v2519_v16, %v1748_v14  ;;  %v2408_v14 = vld [vmem:[%s4002_s1 + $0x560] sm:$0xf] }
  0xa7   :  { %1633 = vmatpush.bf16.msrb.mxu3 %v2349_v25  ;;  %1563 = vmatmul.bf16.vlgmr.msra.gmra.mxu1 %v2999_v7  ;;  %v2068_v25 = vld [vmem:[%s4002_s1 + $0x2b8] sm:$0xf] }
  0xa8   :  { %1595 = vmatpush.bf16.msrb.mxu0 %v1849_v22  ;;  %1607 = vmatpush.bf16.msrb.mxu1 %v2029_v30  ;;  %v1356_v22 = vpop.f32.mrf.mxu1  ;;  %v2514_v30 = vld [vmem:[%s4002_s1 + $0x20] sm:$0xf0]  ;;  %v2069_v37 = vor.u32 %v2599_v26, %v2068_v25  ;;  %v2368_v25 = vld [vmem:[%s4002_s1 + $0x510] sm:$0xf] }
  0xa9   :  { %1621 = vmatpush.bf16.msrb.mxu2 %v2169_v31  ;;  %v2228_v31 = vld [vmem:[%s4002_s1 + $0x3f8] sm:$0xf]  ;;  %v1382_v33 = vpop.f32.mrf.mxu3  ;;  %v1369_v40 = vpop.f32.mrf.mxu2  ;;  %v1729_v44 = vor.u32 %v2514_v30, %v1728_v28  ;;  %v1357_v59 = vadd.f32 %v1356_v22, %v3849_v5  ;;  %v2674_v26 = vld [vmem:[%s4002_s1 + $0x520] sm:$0xf0] }
  0xaa   :  { %v2229_v45 = vor.u32 %v2639_v32, %v2228_v31  ;;  %v2369_v28 = vor.u32 %v2674_v26, %v2368_v25 }
  0xab   :  { %1634 = vmatpush.bf16.msrb.mxu3 %v2329_v38  ;;  %v1345_v38 = vpop.f32.mrf.mxu0  ;;  %v1370_v2 = vadd.f32 %v1369_v40, %v1357_v59 }
  0xac   :  { %1596 = vmatpush.bf16.msrb.mxu0 %v1829_v36  ;;  %1608 = vmatpush.bf16.msrb.mxu1 %v2009_v42  ;;  %v1929_v36 = vor.u32 %v2564_v24, %v1928_v21  ;;  %v2048_v42 = vld [vmem:[%s4002_s1 + $0x290] sm:$0xf] }
  0xad   :  { %1622 = vmatpush.bf16.msrb.mxu2 %v2149_v43  ;;  %v2594_v43 = vld [vmem:[%s4002_s1 + $0x2a0] sm:$0xf0]  ;;  %v1383_v6 = vadd.f32 %v1382_v33, %v1370_v2 }
  0xae   :  { %v2049_v52 = vor.u32 %v2594_v43, %v2048_v42 }
  0xaf   :  { %1635 = vmatpush.bf16.msrb.mxu3 %v2309_v50  ;;  %v2704_v50 = vld [vmem:[%s4002_s1 + $0x610] sm:$0xf0] }
  0xb0   :  { %1597 = vmatpush.bf16.msrb.mxu0 %v1809_v48  ;;  %1609 = vmatpush.bf16.msrb.mxu1 %v1989_v54  ;;  %v2634_v48 = vld [vmem:[%s4002_s1 + $0x3e0] sm:$0xf0]  ;;  %v1358_v53 = vpop.f32.mrf.mxu1  ;;  %v1888_v54 = vld [vmem:[%s4002_s1 + $0x150] sm:$0xf]  ;;  %v2489_v58 = vor.u32 %v2704_v50, %v2488_v49 }
  0xb1   :  { %1623 = vmatpush.bf16.msrb.mxu2 %v2129_v55  ;;  %v2554_v55 = vld [vmem:[%s4002_s1 + $0x160] sm:$0xf0]  ;;  %v2209_v56 = vor.u32 %v2634_v48, %v2208_v47  ;;  %v1384_v60 = vpop.f32.mrf.mxu3  ;;  %v1371_v0 = vpop.f32.mrf.mxu2 }
  0xb3   :  { %1636 = vmatpush.bf16.msrb.mxu3 %v2289_v63  ;;  %v1889_v63 = vor.u32 %v2554_v55, %v1888_v54 }
  0xb4   :  { %1598 = vmatpush.bf16.msrb.mxu0 %v1789_v61  ;;  %1610 = vmatpush.bf16.msrb.mxu1 %v1969_v3  ;;  %v2468_v61 = vld [vmem:[%s4002_s1 + $0x5d8] sm:$0xf]  ;;  %v2448_v3 = vld [vmem:[%s4002_s1 + $0x5b0] sm:$0xf] }
  0xb5   :  { %1624 = vmatpush.bf16.msrb.mxu2 %v2109_v4  ;;  %v2469_v1 = vor.u32 %v2699_v62, %v2468_v61  ;;  %v2694_v4 = vld [vmem:[%s4002_s1 + $0x5c0] sm:$0xf0] }
  0xb6   :  { %v2449_v5 = vor.u32 %v2694_v4, %v2448_v3 }
  0xb7   :  { %1637 = vmatpush.bf16.msrb.mxu3 %v2269_v15 }
  0xb8   :  { %1599 = vmatpush.bf16.msrb.mxu0 %v1769_v13  ;;  %1611 = vmatpush.bf16.msrb.mxu1 %v1949_v19  ;;  %v2388_v19 = vld [vmem:[%s4002_s1 + $0x538] sm:$0xf] }
  0xb9   :  { %1625 = vmatpush.bf16.msrb.mxu2 %v2089_v20  ;;  %v2679_v20 = vld [vmem:[%s4002_s1 + $0x548] sm:$0xf0] }
  0xba   :  { %v2389_v22 = vor.u32 %v2679_v20, %v2388_v19 }
  0xbb   :  { %1638 = vmatpush.bf16.msrb.mxu3 %v2249_v29 }
  0xbc   :  { %1600 = vmatpush.bf16.msrb.mxu0 %v1749_v27  ;;  %1612 = vmatpush.bf16.msrb.mxu1 %v1929_v36 }
  0xbd   :  { %1626 = vmatpush.bf16.msrb.mxu2 %v2069_v37 }
  0xbf   :  { %1639 = vmatpush.bf16.msrb.mxu3 %v2229_v45 }
  0xc0   :  { %1601 = vmatpush.bf16.msrb.mxu0 %v1729_v44  ;;  %1613 = vmatpush.bf16.msrb.mxu1 %v1909_v51  ;;  %v1395_v10 = vpop.f32.mrf.mxu0 }
  0xc1   :  { %1627 = vmatpush.bf16.msrb.mxu2 %v2049_v52  ;;  %v1396_v11 = vadd.f32 %v1395_v10, %v1383_v6 }
  0xc3   :  { %1602 = vmatmul.bf16.vlgmr.msrb.gmra.mxu0 %v2979_v57  ;;  %1640 = vmatpush.bf16.msrb.mxu3 %v2209_v56  ;;  %v3954_v57 = vld [vmem:[%s4004_s2] sm:$0x1f] }
  0xc4   :  { %1646 = vmatpush.bf16.msra.mxu0 %v2509_v46  ;;  %1628 = vmatmul.bf16.vlgmr.msrb.gmra.mxu2 %v2999_v7  ;;  %v2428_v7 = vld [vmem:[%s4002_s1 + $0x588] sm:$0xf]  ;;  %v1408_v18 = vpop.f32.mrf.mxu1  ;;  %v1680_v36 = vperm.slane %v3954_v57, 1  ;;  %v1681_v52 = vperm.slane %v3954_v57, 2  ;;  %v1683_v25 = vperm.slane %v3954_v57, 4 }
  0xc5   :  { %1614 = vmatpush.bf16.msrb.mxu1 %v1889_v63  ;;  %v2429_v13 = vor.u32 %v2689_v9, %v2428_v7 }
  0xc6   :  { %1641 = vmatmul.bf16.vlgmr.msrb.gmra.mxu3 %v3001_v8  ;;  %v1679_v8 = vperm.slane %v3954_v57, 0 }
  0xc8   :  { %1647 = vmatpush.bf16.msra.mxu0 %v2489_v58  ;;  %1615 = vmatmul.bf16.vlgmr.msrb.gmra.mxu1 %v3013_v12  ;;  %v2684_v12 = vld [vmem:[%s4002_s1 + $0x570] sm:$0xf0]  ;;  %v1689_v15 = vadd.f32 %v1679_v8, %v1396_v11  ;;  %v1397_v21 = vpop.f32.mrf.mxu0 }
  0xc9   :  { %v2409_v17 = vor.u32 %v2684_v12, %v2408_v14  ;;  %v1421_v24 = vpop.f32.mrf.mxu2  ;;  %v1434_v27 = vpop.f32.mrf.mxu3 }
  0xca   :  { %v1694_v16 = vmax.f32 %v1689_v15, 0.0  ;;  %v1422_v32 = vadd.f32 %v1421_v24, %v1408_v18 }
  0xcc   :  { %1648 = vmatpush.bf16.msra.mxu0 %v2469_v1  ;;  %1699 = vst [vmem:[%s4005_s3] sm:$0xff] %v1694_v16  ;;  %v1410_v29 = vpop.f32.mrf.mxu1  ;;  %v1435_v33 = vadd.f32 %v1434_v27, %v1422_v32 }
  0xd0   :  { %1649 = vmatpush.bf16.msra.mxu0 %v2449_v5  ;;  %v1682_v5 = vperm.slane %v3954_v57, 3 }
  0xd1   :  { %v1423_v30 = vpop.f32.mrf.mxu2  ;;  %v1436_v31 = vpop.f32.mrf.mxu3 }
  0xd4   :  { %1650 = vmatpush.bf16.msra.mxu0 %v2429_v13 }
  0xd8   :  { %1651 = vmatpush.bf16.msra.mxu0 %v2409_v17 }
  0xdc   :  { %1652 = vmatpush.bf16.msra.mxu0 %v2389_v22 }
  0xe0   :  { %1653 = vmatpush.bf16.msra.mxu0 %v2369_v28  ;;  %v1447_v34 = vpop.f32.mrf.mxu0 }
  0xe1   :  { %v1448_v35 = vadd.f32 %v1447_v34, %v1435_v33 }
  0xe3   :  { %1654 = vmatmul.bf16.vlgmr.msra.gmra.mxu0 %v3159_v23 }
  0xe4   :  { %v1460_v37 = vpop.f32.mrf.mxu1 }
  0xe5   :  { %v1461_v39 = vadd.f32 %v1460_v37, %v1448_v35 }
  0xe7   :  { %v1690_v41 = vadd.f32 %v1680_v36, %v1461_v39 }
  0xe8   :  { %v1449_v38 = vpop.f32.mrf.mxu0 }
  0xe9   :  { %v1473_v40 = vpop.f32.mrf.mxu2  ;;  %v1486_v42 = vpop.f32.mrf.mxu3  ;;  %v1695_v43 = vmax.f32 %v1690_v41, 0.0 }
  0xea   :  { %v1487_v46 = vadd.f32 %v1486_v42, %v1473_v40 }
  0xeb   :  { %1700 = vst [vmem:[%s4005_s3 + $0x8] sm:$0xff] %v1695_v43 }
  0xec   :  { %v1462_v44 = vpop.f32.mrf.mxu1 }
  0xf1   :  { %v1475_v45 = vpop.f32.mrf.mxu2  ;;  %v1488_v23 = vpop.f32.mrf.mxu3 }
 0x100   :  { %v1499_v47 = vpop.f32.mrf.mxu0 }
 0x101   :  { %v1500_v48 = vadd.f32 %v1499_v47, %v1487_v46 }
 0x104   :  { %v1512_v49 = vpop.f32.mrf.mxu1 }
 0x105   :  { %v1513_v51 = vadd.f32 %v1512_v49, %v1500_v48 }
 0x108   :  { %v1501_v50 = vpop.f32.mrf.mxu0 }
 0x109   :  { %v1525_v53 = vpop.f32.mrf.mxu2  ;;  %v1538_v55 = vpop.f32.mrf.mxu3 }
 0x10a   :  { %v1526_v54 = vadd.f32 %v1525_v53, %v1513_v51 }
 0x10c   :  { %v1691_v56 = vadd.f32 %v1681_v52, %v1526_v54  ;;  %v1514_v59 = vpop.f32.mrf.mxu1 }
 0x10e   :  { %v1696_v58 = vmax.f32 %v1691_v56, 0.0 }
 0x110   :  { %1701 = vst [vmem:[%s4005_s3 + $0x10] sm:$0xff] %v1696_v58 }
 0x111   :  { %v1527_v60 = vpop.f32.mrf.mxu2  ;;  %v1540_v61 = vpop.f32.mrf.mxu3 }
 0x120   :  { %v1551_v62 = vpop.f32.mrf.mxu0 }
 0x121   :  { %v1552_v63 = vadd.f32 %v1551_v62, %v1538_v55 }
 0x124   :  { %v1564_v0 = vpop.f32.mrf.mxu1 }
 0x125   :  { %v1565_v2 = vadd.f32 %v1564_v0, %v1552_v63 }
 0x128   :  { %v1553_v1 = vpop.f32.mrf.mxu0 }
 0x129   :  { %v1577_v3 = vpop.f32.mrf.mxu2  ;;  %v1590_v6 = vpop.f32.mrf.mxu3 }
 0x12a   :  { %v1578_v4 = vadd.f32 %v1577_v3, %v1565_v2 }
 0x12c   :  { %v1591_v7 = vadd.f32 %v1590_v6, %v1578_v4  ;;  %v1566_v8 = vpop.f32.mrf.mxu1 }
 0x12e   :  { %v1692_v9 = vadd.f32 %v1682_v5, %v1591_v7 }
 0x130   :  { %v1697_v10 = vmax.f32 %v1692_v9, 0.0 }
 0x131   :  { %v1579_v11 = vpop.f32.mrf.mxu2  ;;  %v1592_v13 = vpop.f32.mrf.mxu3 }
 0x132   :  { %1702 = vst [vmem:[%s4005_s3 + $0x18] sm:$0xff] %v1697_v10 }
 0x140   :  { %v1603_v14 = vpop.f32.mrf.mxu0 }
 0x145   :  { %v1616_v12 = vpop.f32.mrf.mxu1 }
 0x146   :  { %v1617_v21 = vadd.f32 %v1616_v12, %v1603_v14 }
 0x147   :  { %v1629_v16 = vpop.f32.mrf.mxu2 }
 0x148   :  { %v1605_v15 = vpop.f32.mrf.mxu0  ;;  %v1630_v22 = vadd.f32 %v1629_v16, %v1617_v21 }
 0x149   :  { %v1642_v17 = vpop.f32.mrf.mxu3 }
 0x14a   :  { %v1643_v24 = vadd.f32 %v1642_v17, %v1630_v22 }
 0x14d   :  { %v1618_v18 = vpop.f32.mrf.mxu1 }
 0x14f   :  { %v1631_v19 = vpop.f32.mrf.mxu2 }
 0x151   :  { %v1644_v20 = vpop.f32.mrf.mxu3 }
 0x160   :  { %v1655_v26 = vpop.f32.mrf.mxu0 }
 0x161   :  { %v1656_v27 = vadd.f32 %v1655_v26, %v1643_v24 }
 0x163   :  { %v1693_v28 = vadd.f32 %v1683_v25, %v1656_v27 }
 0x165   :  { %v1698_v29 = vmax.f32 %v1693_v28, 0.0 }
 0x167   :  { %1703 = vst [vmem:[%s4005_s3 + $0x20] sm:$0xff] %v1698_v29 }
 0x168   :  { %v1657_v30 = vpop.f32.mrf.mxu0 }

</bundles_post_ra>
